<compile_context>
chip_gen: v6e
topology: v6e:2x2x1
jax: 0.10.0
libtpu: 0.0.40
codegen_flags: <defaults>
</compile_context>

<pallas_src>
import functools

import jax
import jax.numpy as jnp
import numpy as np
from jax import lax
from jax.experimental import pallas as pl
from jax.experimental.pallas import tpu as pltpu

_BN_EPS = 1e-5


# ---------------------------------------------------------------------------
# Fused kernel: conv1+bn1+relu -> grouped 3x3+bn2+relu -> conv3+bn3,
#               shortcut(+bn), DPN merge, relu.  One grid step = Nb images.
# ---------------------------------------------------------------------------
def _bottleneck_kernel(x_ref, w1_ref, b1_ref, w2_ref, b2_ref, w3c_ref, bm_ref,
                       *rest, Nb, H, W, Ho, Wo, stride, depthwise, first_layer):
    if first_layer:
        wsc_ref, o_ref, y1p_ref = rest
    else:
        o_ref, y1p_ref = rest

    C_last = x_ref.shape[-1]
    C_in = w1_ref.shape[-1]
    P = Nb * Ho * Wo

    x = x_ref[...]                                      # (Nb, H, W, C_last)
    x2d = x.reshape(Nb * H * W, C_last)
    x2d_mx = x2d if x2d.dtype == jnp.bfloat16 else x2d.astype(jnp.bfloat16)

    # ---- conv1 (1x1) + bn1 + relu : bf16 MXU operands, f32 accumulate ------
    y1 = jnp.dot(x2d_mx, w1_ref[...], preferred_element_type=jnp.float32)
    y1 = jnp.maximum(y1 + b1_ref[...], 0.0)             # (Nb*H*W, C_in) f32

    # ---- padded conv1 output lives in a persistent VMEM scratch ------------
    # Re-zero every step (tiny) so the border is valid even when the parallel
    # grid axis is split across TensorCores (each core has its own scratch).
    y1p_ref[...] = jnp.zeros(y1p_ref.shape, y1p_ref.dtype)
    y1p_ref[:, 1:H + 1, 1:W + 1, :] = (
        y1.reshape(Nb, H, W, C_in).astype(y1p_ref.dtype))

    def tap_window(ky, kx):
        if stride == 1:
            return y1p_ref[:, ky:ky + Ho, kx:kx + Wo, :]
        # TODO(synk): stride > 1 uses a strided value slice; only stride == 1
        # is exercised by the self-test below.
        win = y1p_ref[:, ky:ky + (Ho - 1) * stride + 1,
                      kx:kx + (Wo - 1) * stride + 1, :]
        return lax.slice(win, (0, 0, 0, 0), win.shape, (1, stride, stride, 1))

    # ---- conv2 (3x3, groups=32, stride) + bn2 + relu ------------------------
    if depthwise:
        # channels-per-group == 1: pure VPU, 9 shifted per-channel f32 FMAs.
        acc2 = jnp.zeros((Nb, Ho, Wo, C_in), jnp.float32)
        for t in range(9):
            ky, kx = divmod(t, 3)
            w2t = w2_ref[t:t + 1, :].reshape(1, 1, 1, C_in)   # bn2 folded
            acc2 = acc2 + tap_window(ky, kx) * w2t
        acc2 = acc2.reshape(P, C_in)
    else:
        # General grouped conv: 9 block-diagonal tap matmuls; operands come
        # straight from the bf16 scratch (cast hoisted out of the tap loop).
        # TODO(synk): block-diagonal weights waste (groups-1)/groups of MXU
        # FLOPs; fine at these widths, revisit for wide grouped configs.
        acc2 = jnp.zeros((P, C_in), jnp.float32)
        for t in range(9):
            ky, kx = divmod(t, 3)
            win = tap_window(ky, kx).reshape(P, C_in)
            acc2 = acc2 + jnp.dot(win, w2_ref[t],
                                  preferred_element_type=jnp.float32)
    y2 = jnp.maximum(acc2 + b2_ref[...], 0.0)            # (P, C_in) f32

    # ---- conv3 (1x1)+bn3, columns pre-mapped into the DPN output layout ----
    y3c = jnp.dot(y2.astype(jnp.bfloat16), w3c_ref[...],
                  preferred_element_type=jnp.float32)    # (P, Cout_pad)

    # ---- shortcut + DPN merge (no lane concat on the first_layer path) -----
    if stride == 1:
        xs2d = x2d
    else:
        xs2d = x[:, ::stride, ::stride, :].reshape(P, C_last)

    if first_layer:
        xs_mx = xs2d if xs2d.dtype == jnp.bfloat16 else xs2d.astype(jnp.bfloat16)
        merged = y3c + bm_ref[...] + jnp.dot(xs_mx, wsc_ref[...],
                                             preferred_element_type=jnp.float32)
    else:
        # Identity shortcut: x passes through in full precision into columns
        # [0:C_last]; conv3's columns are already mapped around it.
        merged = y3c + bm_ref[...]
        merged = jnp.concatenate(
            [merged[:, :C_last] + xs2d.astype(jnp.float32),
             merged[:, C_last:]], axis=-1)

    merged = jnp.maximum(merged, 0.0)
    o_ref[...] = merged.reshape(Nb, Ho, Wo, merged.shape[-1]).astype(o_ref.dtype)


# ---------------------------------------------------------------------------
# One-time host-side (numpy) weight preprocessing: BN folding, grouped-conv
# weight layout, and column-mapping conv3 / shortcut into the DPN output.
# ---------------------------------------------------------------------------
def _fold_bn_np(bn, eps=_BN_EPS):
    gamma, beta, mean, var = (np.asarray(t, np.float32) for t in bn)
    scale = gamma / np.sqrt(var + eps)
    bias = beta - mean * scale
    return scale, bias


def prepare_bottleneck_params(params, *, out_planes, dense_depth, stride,
                              first_layer, groups=32):
    w1 = np.asarray(params['w1'], np.float32)[:, :, 0, 0]      # (C_in, C_last)
    C_in, C_last = w1.shape
    s1, b1 = _fold_bn_np(params['bn1'])
    w1s = w1.T * s1[None, :]                                   # (C_last, C_in)

    w2 = np.asarray(params['w2'], np.float32)                  # (C_in, cpg, 3, 3)
    cpg = w2.shape[1]
    s2, b2 = _fold_bn_np(params['bn2'])
    depthwise = (cpg == 1)
    if depthwise:
        # (9, C_in): per-tap per-channel weight, bn2 folded, f32 (VPU path).
        w2k = jnp.asarray(w2[:, 0].reshape(C_in, 9).T * s2[None, :], jnp.float32)
    else:
        # (9, C_in, C_in) block-diagonal tap weights, built once with numpy.
        w2bd = np.zeros((9, C_in, C_in), np.float32)
        for g in range(groups):
            blk = w2[g * cpg:(g + 1) * cpg]                    # (cpg, cpg, 3, 3)
            w2bd[:, g * cpg:(g + 1) * cpg, g * cpg:(g + 1) * cpg] = \
                np.transpose(blk.reshape(cpg, cpg, 9), (2, 1, 0))
        w2k = jnp.asarray(w2bd * s2[None, None, :], jnp.bfloat16)

    w3 = np.asarray(params['w3'], np.float32)[:, :, 0, 0]      # (C3, C_in)
    C3 = w3.shape[0]
    s3, b3 = _fold_bn_np(params['bn3'])
    w3s = w3.T * s3[None, :]                                   # (C_in, C3)

    d = out_planes
    cx = C3 if first_layer else C_last
    cout = cx + (C3 - d)
    cout_pad = int(-(-cout // 128) * 128)                      # lane-dense store

    # Column-map conv3 directly into the DPN output layout:
    #   out[:, 0:d] += y3[:, 0:d] ; out[:, cx:cout] = y3[:, d:C3]
    w3c = np.zeros((C_in, cout_pad), np.float32)
    w3c[:, 0:d] = w3s[:, 0:d]
    w3c[:, cx:cout] = w3s[:, d:C3]
    bmerge = np.zeros((cout_pad,), np.float32)
    bmerge[0:d] = b3[0:d]
    bmerge[cx:cout] = b3[d:C3]

    prep = {
        'w1s': jnp.asarray(w1s, jnp.bfloat16),
        'b1': jnp.asarray(b1[None, :], jnp.float32),
        'w2k': w2k,
        'b2': jnp.asarray(b2[None, :], jnp.float32),
        'w3c': jnp.asarray(w3c, jnp.bfloat16),
    }
    if first_layer:
        wsc = np.asarray(params['wsc'], np.float32)[:, :, 0, 0]   # (C3, C_last)
        ssc, bsc = _fold_bn_np(params['bnsc'])
        wscs = wsc.T * ssc[None, :]                                # (C_last, C3)
        wscc = np.zeros((C_last, cout_pad), np.float32)
        wscc[:, 0:cx] = wscs            # out[:, 0:cx] gets the shortcut columns
        bmerge[0:cx] += bsc
        prep['wscc'] = jnp.asarray(wscc, jnp.bfloat16)
    prep['bm'] = jnp.asarray(bmerge[None, :], jnp.float32)
    prep['cfg'] = dict(out_planes=d, dense_depth=dense_depth, stride=stride,
                       first_layer=first_layer, depthwise=depthwise,
                       cx=cx, cout=cout, cout_pad=cout_pad)
    return prep


# ---------------------------------------------------------------------------
# Tiling / VMEM-budget helpers.
# ---------------------------------------------------------------------------
def _vmem_limit_bytes():
    # 3/4 of physical VMEM (v5e/v6e: 128 MiB, v7x: 64 MiB), capped at 96 MiB.
    try:
        cap = int(pltpu.get_tpu_info().vmem_capacity_bytes)
    except Exception:
        cap = 64 * 1024 * 1024
    return min(96 * 1024 * 1024, (cap * 3) // 4)


def _choose_nb(N, H, W, Ho, Wo, c_last, c_in, cout_pad, x_itemsize, vmem_limit):
    """Images per grid step: fill MXU rows (>=256) without blowing VMEM and
    keep >= 2 grid steps so v7x's two TensorCores both get work."""
    per_img = (2 * H * W * c_last * x_itemsize             # double-buffered in
               + 2 * Ho * Wo * cout_pad * 4                # double-buffered out
               + (H + 2) * (W + 2) * c_in * 4              # padded-y1 scratch
               + 3 * Ho * Wo * max(c_in, cout_pad) * 4)    # live intermediates
    budget = max(vmem_limit // 2, per_img)
    divisors = [nb for nb in range(1, N + 1) if N % nb == 0]
    fits = [nb for nb in divisors if nb * per_img <= budget] or [1]
    two_steps = [nb for nb in fits if N // nb >= 2]
    pool = two_steps if two_steps else fits
    small = [nb for nb in pool if nb * Ho * Wo <= 1024]
    pool = small if small else [min(pool)]
    return max(pool)


# ---------------------------------------------------------------------------
# Forward pass.  NHWC-native entry point (no layout transposes) plus an NCHW
# wrapper that matches the PyTorch module interface.
# ---------------------------------------------------------------------------
def bottleneck_forward_nhwc(x_nhwc, prep):
    cfg = prep['cfg']
    stride = cfg['stride']
    first_layer, depthwise = cfg['first_layer'], cfg['depthwise']
    cout_pad = cfg['cout_pad']

    N, H, W, C_last = x_nhwc.shape
    Ho = (H - 1) // stride + 1
    Wo = (W - 1) // stride + 1
    C_in = prep['w1s'].shape[1]

    # bf16 activations at the HBM boundary when x only feeds matmuls
    # (first_layer); keep f32 when x also passes through to the output.
    in_dtype = jnp.bfloat16 if first_layer else jnp.float32
    x_nhwc = x_nhwc.astype(in_dtype)

    vmem_limit = _vmem_limit_bytes()
    Nb = _choose_nb(N, H, W, Ho, Wo, C_last, C_in, cout_pad,
                    jnp.dtype(in_dtype).itemsize, vmem_limit)

    kernel = functools.partial(
        _bottleneck_kernel, Nb=Nb, H=H, W=W, Ho=Ho, Wo=Wo, stride=stride,
        depthwise=depthwise, first_layer=first_layer)

    inputs = [x_nhwc, prep['w1s'], prep['b1'], prep['w2k'], prep['b2'],
              prep['w3c'], prep['bm']]
    w2_spec = (pl.BlockSpec(prep['w2k'].shape, lambda n: (0, 0))
               if prep['w2k'].ndim == 2
               else pl.BlockSpec(prep['w2k'].shape, lambda n: (0, 0, 0)))
    in_specs = [
        pl.BlockSpec((Nb, H, W, C_last), lambda n: (n, 0, 0, 0)),
        pl.BlockSpec(prep['w1s'].shape, lambda n: (0, 0)),
        pl.BlockSpec(prep['b1'].shape, lambda n: (0, 0)),
        w2_spec,
        pl.BlockSpec(prep['b2'].shape, lambda n: (0, 0)),
        pl.BlockSpec(prep['w3c'].shape, lambda n: (0, 0)),
        pl.BlockSpec(prep['bm'].shape, lambda n: (0, 0)),
    ]
    if first_layer:
        inputs.append(prep['wscc'])
        in_specs.append(pl.BlockSpec(prep['wscc'].shape, lambda n: (0, 0)))

    # TODO(synk): for large spatial sizes (56x56 / 28x28) add a row-tile loop
    # with a 1-row halo so whole-image intermediates stay within VMEM/vregs.
    pad_dtype = jnp.float32 if depthwise else jnp.bfloat16
    out_nhwc = pl.pallas_call(
        kernel,
        out_shape=jax.ShapeDtypeStruct((N, Ho, Wo, cout_pad), jnp.float32),
        grid_spec=pltpu.PrefetchScalarGridSpec(
            num_scalar_prefetch=0,
            grid=(N // Nb,),
            in_specs=in_specs,
            out_specs=pl.BlockSpec((Nb, Ho, Wo, cout_pad),
                                   lambda n: (n, 0, 0, 0)),
            scratch_shapes=[pltpu.VMEM((Nb, H + 2, W + 2, C_in), pad_dtype)],
        ),
        compiler_params=pltpu.CompilerParams(
            dimension_semantics=("parallel",),
            vmem_limit_bytes=vmem_limit),
    )(*inputs)
    # Channels [cout:cout_pad] are zero padding (lane-dense stores); callers
    # that stay NHWC can simply ignore them downstream.
    return out_nhwc


def bottleneck_forward(x_nchw, prep):
    """NCHW interface matching the PyTorch module (used by the self-test)."""
    cout = prep['cfg']['cout']
    x_nhwc = jnp.transpose(x_nchw, (0, 2, 3, 1))
    out_nhwc = bottleneck_forward_nhwc(x_nhwc, prep)
    # Padding slice fuses into the single output transpose.
    return jnp.transpose(out_nhwc[..., :cout], (0, 3, 1, 2))


# ---------------------------------------------------------------------------
# Pure-JAX reference (lax.conv) for validation.
# ---------------------------------------------------------------------------
def reference_forward(x, params, *, out_planes, stride, first_layer):
    dn = ('NCHW', 'OIHW', 'NCHW')

    def bn(y, g, b, m, v):
        s = g * lax.rsqrt(v + _BN_EPS)
        return y * s[None, :, None, None] + (b - m * s)[None, :, None, None]

    y = lax.conv_general_dilated(x, params['w1'], (1, 1), 'VALID',
                                 dimension_numbers=dn)
    y = jax.nn.relu(bn(y, *params['bn1']))
    y = lax.conv_general_dilated(y, params['w2'], (stride, stride),
                                 ((1, 1), (1, 1)), feature_group_count=32,
                                 dimension_numbers=dn)
    y = jax.nn.relu(bn(y, *params['bn2']))
    y = lax.conv_general_dilated(y, params['w3'], (1, 1), 'VALID',
                                 dimension_numbers=dn)
    y = bn(y, *params['bn3'])
    if first_layer:
        xs = lax.conv_general_dilated(x, params['wsc'], (stride, stride),
                                      'VALID', dimension_numbers=dn)
        xs = bn(xs, *params['bnsc'])
    else:
        xs = x[:, :, ::stride, ::stride]
    d = out_planes
    out = jnp.concatenate([xs[:, :d] + y[:, :d], xs[:, d:], y[:, d:]], axis=1)
    return jax.nn.relu(out)


def _init_bn(key, c):
    k1, k2, k3, k4 = jax.random.split(key, 4)
    gamma = jax.random.uniform(k1, (c,), jnp.float32, 0.5, 1.5)
    beta = jax.random.normal(k2, (c,), jnp.float32) * 0.1
    mean = jax.random.normal(k3, (c,), jnp.float32) * 0.1
    var = jax.random.uniform(k4, (c,), jnp.float32, 0.5, 1.5)
    return (gamma, beta, mean, var)


if __name__ == "__main__":
    # Bottleneck(last_planes=64, in_planes=32, out_planes=64, dense_depth=16,
    #            stride=1, first_layer=True); groups=32 -> depthwise 3x3.
    last_planes, in_planes, out_planes, dense_depth = 64, 32, 64, 16
    stride, first_layer = 1, True
    N, H, W = 8, 8, 8            # N=8 -> Nb=4 images/step, grid of 2 steps
    c3 = out_planes + dense_depth

    key = jax.random.PRNGKey(0)
    ks = jax.random.split(key, 10)
    x = jax.random.normal(ks[0], (N, last_planes, H, W), jnp.float32)

    params = {
        'w1': jax.random.normal(ks[1], (in_planes, last_planes, 1, 1),
                                jnp.float32) * 0.1,
        'bn1': _init_bn(ks[2], in_planes),
        'w2': jax.random.normal(ks[3], (in_planes, in_planes // 32, 3, 3),
                                jnp.float32) * 0.1,
        'bn2': _init_bn(ks[4], in_planes),
        'w3': jax.random.normal(ks[5], (c3, in_planes, 1, 1), jnp.float32) * 0.1,
        'bn3': _init_bn(ks[6], c3),
        'wsc': jax.random.normal(ks[7], (c3, last_planes, 1, 1),
                                 jnp.float32) * 0.1,
        'bnsc': _init_bn(ks[8], c3),
    }

    # One-time host-side weight preprocessing (hoisted out of the forward path).
    prep = prepare_bottleneck_params(params, out_planes=out_planes,
                                     dense_depth=dense_depth, stride=stride,
                                     first_layer=first_layer)

    out = jax.block_until_ready(bottleneck_forward(x, prep))
    assert out.shape == (N, out_planes + 2 * dense_depth, H, W), out.shape

    ref = jax.block_until_ready(
        reference_forward(x, params, out_planes=out_planes, stride=stride,
                          first_layer=first_layer))
    err = float(jnp.max(jnp.abs(out - ref)))
    ref_max = float(jnp.max(jnp.abs(ref)))
    # bf16 MXU operands (f32 accumulation) vs f32 reference -> loosened tol.
    assert np.isfinite(err) and err <= 2e-2 * max(1.0, ref_max), (err, ref_max)
    print("KERNEL_OK")
</pallas_src>

<mosaic_0001>
module attributes {stable_mosaic.version = 11 : i64} {
  func.func @_bottleneck_kernel(%arg0: i32, %arg1: memref<4x8x8x64xbf16, #tpu.memory_space<vmem>>, %arg2: memref<64x32xbf16, #tpu.memory_space<vmem>>, %arg3: memref<1x32xf32, #tpu.memory_space<vmem>>, %arg4: memref<9x32xf32, #tpu.memory_space<vmem>>, %arg5: memref<1x32xf32, #tpu.memory_space<vmem>>, %arg6: memref<32x128xbf16, #tpu.memory_space<vmem>>, %arg7: memref<1x128xf32, #tpu.memory_space<vmem>>, %arg8: memref<64x128xbf16, #tpu.memory_space<vmem>>, %arg9: memref<4x8x8x128xf32, #tpu.memory_space<vmem>>, %arg10: memref<4x10x10x32xf32, #tpu.memory_space<vmem>>) attributes {dimension_semantics = [#tpu.dimension_semantics<parallel>], iteration_bounds = array<i64: 2>, scalar_prefetch = 0 : i64, scratch_operands = 1 : i64, tpu.core_type = #tpu.core_type<tc>, window_params = [{transform_indices = @transform_0, window_bounds = array<i64: 4, 8, 8, 64>}, {pipeline_mode = #tpu.pipeline_mode<synchronous>, transform_indices = @transform_1, window_bounds = array<i64: 64, 32>}, {pipeline_mode = #tpu.pipeline_mode<synchronous>, transform_indices = @transform_2, window_bounds = array<i64: 1, 32>}, {pipeline_mode = #tpu.pipeline_mode<synchronous>, transform_indices = @transform_3, window_bounds = array<i64: 9, 32>}, {pipeline_mode = #tpu.pipeline_mode<synchronous>, transform_indices = @transform_4, window_bounds = array<i64: 1, 32>}, {pipeline_mode = #tpu.pipeline_mode<synchronous>, transform_indices = @transform_5, window_bounds = array<i64: 32, 128>}, {pipeline_mode = #tpu.pipeline_mode<synchronous>, transform_indices = @transform_6, window_bounds = array<i64: 1, 128>}, {pipeline_mode = #tpu.pipeline_mode<synchronous>, transform_indices = @transform_7, window_bounds = array<i64: 64, 128>}, {transform_indices = @transform_8, window_bounds = array<i64: 4, 8, 8, 128>}]} {
    %c0 = arith.constant 0 : index
    %c0_0 = arith.constant 0 : index
    %c0_1 = arith.constant 0 : index
    %c0_2 = arith.constant 0 : index
    %0 = vector.load %arg1[%c0, %c0_0, %c0_1, %c0_2] : memref<4x8x8x64xbf16, #tpu.memory_space<vmem>>, vector<4x8x8x64xbf16>
    %1 = vector.shape_cast %0 : vector<4x8x8x64xbf16> to vector<256x64xbf16>
    %c0_3 = arith.constant 0 : index
    %c0_4 = arith.constant 0 : index
    %2 = vector.load %arg2[%c0_3, %c0_4] : memref<64x32xbf16, #tpu.memory_space<vmem>>, vector<64x32xbf16>
    %cst = arith.constant dense<0.000000e+00> : vector<256x32xf32>
    %3 = tpu.matmul %1, %2, %cst {dimension_numbers = #tpu.dot_dimension_numbers<[1], [0], [0], [1], [0, 0, 1, 1], [], []>} : vector<256x64xbf16>, vector<64x32xbf16>, vector<256x32xf32> -> vector<256x32xf32>
    %c0_5 = arith.constant 0 : index
    %c0_6 = arith.constant 0 : index
    %4 = vector.load %arg3[%c0_5, %c0_6] : memref<1x32xf32, #tpu.memory_space<vmem>>, vector<1x32xf32>
    %5 = vector.broadcast %4 : vector<1x32xf32> to vector<256x32xf32>
    %6 = arith.addf %3, %5 : vector<256x32xf32>
    %cst_7 = arith.constant 0.000000e+00 : f32
    %7 = vector.broadcast %cst_7 : f32 to vector<256x32xf32>
    %8 = arith.maximumf %6, %7 : vector<256x32xf32>
    %cst_8 = arith.constant 0.000000e+00 : f32
    %9 = vector.broadcast %cst_8 : f32 to vector<4x10x10x32xf32>
    %c0_9 = arith.constant 0 : index
    %c0_10 = arith.constant 0 : index
    %c0_11 = arith.constant 0 : index
    %c0_12 = arith.constant 0 : index
    %10 = vector.load %arg10[%c0_9, %c0_10, %c0_11, %c0_12] : memref<4x10x10x32xf32, #tpu.memory_space<vmem>>, vector<4x10x10x32xf32>
    tpu.vector_store %arg10[%c0_9, %c0_10, %c0_11, %c0_12], %9 {strides = array<i32>} : memref<4x10x10x32xf32, #tpu.memory_space<vmem>>, vector<4x10x10x32xf32>,
    %11 = vector.shape_cast %8 : vector<256x32xf32> to vector<4x8x8x32xf32>
    %c0_13 = arith.constant 0 : index
    %c1 = arith.constant 1 : index
    %c1_14 = arith.constant 1 : index
    %c0_15 = arith.constant 0 : index
    %12 = vector.load %arg10[%c0_13, %c1, %c1_14, %c0_15] : memref<4x10x10x32xf32, #tpu.memory_space<vmem>>, vector<4x8x8x32xf32>
    tpu.vector_store %arg10[%c0_13, %c1, %c1_14, %c0_15], %11 {strides = array<i32>} : memref<4x10x10x32xf32, #tpu.memory_space<vmem>>, vector<4x8x8x32xf32>,
    %cst_16 = arith.constant 0.000000e+00 : f32
    %13 = vector.broadcast %cst_16 : f32 to vector<4x8x8x32xf32>
    %c0_17 = arith.constant 0 : index
    %c0_18 = arith.constant 0 : index
    %14 = vector.load %arg4[%c0_17, %c0_18] : memref<9x32xf32, #tpu.memory_space<vmem>>, vector<1x32xf32>
    %15 = vector.shape_cast %14 : vector<1x32xf32> to vector<1x1x1x32xf32>
    %c0_19 = arith.constant 0 : index
    %c0_20 = arith.constant 0 : index
    %c0_21 = arith.constant 0 : index
    %c0_22 = arith.constant 0 : index
    %16 = vector.load %arg10[%c0_19, %c0_20, %c0_21, %c0_22] : memref<4x10x10x32xf32, #tpu.memory_space<vmem>>, vector<4x8x8x32xf32>
    %17 = vector.broadcast %15 : vector<1x1x1x32xf32> to vector<4x8x8x32xf32>
    %18 = arith.mulf %16, %17 : vector<4x8x8x32xf32>
    %19 = arith.addf %13, %18 : vector<4x8x8x32xf32>
    %c1_23 = arith.constant 1 : index
    %c0_24 = arith.constant 0 : index
    %20 = vector.load %arg4[%c1_23, %c0_24] : memref<9x32xf32, #tpu.memory_space<vmem>>, vector<1x32xf32>
    %21 = vector.shape_cast %20 : vector<1x32xf32> to vector<1x1x1x32xf32>
    %c0_25 = arith.constant 0 : index
    %c0_26 = arith.constant 0 : index
    %c1_27 = arith.constant 1 : index
    %c0_28 = arith.constant 0 : index
    %22 = vector.load %arg10[%c0_25, %c0_26, %c1_27, %c0_28] : memref<4x10x10x32xf32, #tpu.memory_space<vmem>>, vector<4x8x8x32xf32>
    %23 = vector.broadcast %21 : vector<1x1x1x32xf32> to vector<4x8x8x32xf32>
    %24 = arith.mulf %22, %23 : vector<4x8x8x32xf32>
    %25 = arith.addf %19, %24 : vector<4x8x8x32xf32>
    %c2 = arith.constant 2 : index
    %c0_29 = arith.constant 0 : index
    %26 = vector.load %arg4[%c2, %c0_29] : memref<9x32xf32, #tpu.memory_space<vmem>>, vector<1x32xf32>
    %27 = vector.shape_cast %26 : vector<1x32xf32> to vector<1x1x1x32xf32>
    %c0_30 = arith.constant 0 : index
    %c0_31 = arith.constant 0 : index
    %c2_32 = arith.constant 2 : index
    %c0_33 = arith.constant 0 : index
    %28 = vector.load %arg10[%c0_30, %c0_31, %c2_32, %c0_33] : memref<4x10x10x32xf32, #tpu.memory_space<vmem>>, vector<4x8x8x32xf32>
    %29 = vector.broadcast %27 : vector<1x1x1x32xf32> to vector<4x8x8x32xf32>
    %30 = arith.mulf %28, %29 : vector<4x8x8x32xf32>
    %31 = arith.addf %25, %30 : vector<4x8x8x32xf32>
    %c3 = arith.constant 3 : index
    %c0_34 = arith.constant 0 : index
    %32 = vector.load %arg4[%c3, %c0_34] : memref<9x32xf32, #tpu.memory_space<vmem>>, vector<1x32xf32>
    %33 = vector.shape_cast %32 : vector<1x32xf32> to vector<1x1x1x32xf32>
    %c0_35 = arith.constant 0 : index
    %c1_36 = arith.constant 1 : index
    %c0_37 = arith.constant 0 : index
    %c0_38 = arith.constant 0 : index
    %34 = vector.load %arg10[%c0_35, %c1_36, %c0_37, %c0_38] : memref<4x10x10x32xf32, #tpu.memory_space<vmem>>, vector<4x8x8x32xf32>
    %35 = vector.broadcast %33 : vector<1x1x1x32xf32> to vector<4x8x8x32xf32>
    %36 = arith.mulf %34, %35 : vector<4x8x8x32xf32>
    %37 = arith.addf %31, %36 : vector<4x8x8x32xf32>
    %c4 = arith.constant 4 : index
    %c0_39 = arith.constant 0 : index
    %38 = vector.load %arg4[%c4, %c0_39] : memref<9x32xf32, #tpu.memory_space<vmem>>, vector<1x32xf32>
    %39 = vector.shape_cast %38 : vector<1x32xf32> to vector<1x1x1x32xf32>
    %c0_40 = arith.constant 0 : index
    %c1_41 = arith.constant 1 : index
    %c1_42 = arith.constant 1 : index
    %c0_43 = arith.constant 0 : index
    %40 = vector.load %arg10[%c0_40, %c1_41, %c1_42, %c0_43] : memref<4x10x10x32xf32, #tpu.memory_space<vmem>>, vector<4x8x8x32xf32>
    %41 = vector.broadcast %39 : vector<1x1x1x32xf32> to vector<4x8x8x32xf32>
    %42 = arith.mulf %40, %41 : vector<4x8x8x32xf32>
    %43 = arith.addf %37, %42 : vector<4x8x8x32xf32>
    %c5 = arith.constant 5 : index
    %c0_44 = arith.constant 0 : index
    %44 = vector.load %arg4[%c5, %c0_44] : memref<9x32xf32, #tpu.memory_space<vmem>>, vector<1x32xf32>
    %45 = vector.shape_cast %44 : vector<1x32xf32> to vector<1x1x1x32xf32>
    %c0_45 = arith.constant 0 : index
    %c1_46 = arith.constant 1 : index
    %c2_47 = arith.constant 2 : index
    %c0_48 = arith.constant 0 : index
    %46 = vector.load %arg10[%c0_45, %c1_46, %c2_47, %c0_48] : memref<4x10x10x32xf32, #tpu.memory_space<vmem>>, vector<4x8x8x32xf32>
    %47 = vector.broadcast %45 : vector<1x1x1x32xf32> to vector<4x8x8x32xf32>
    %48 = arith.mulf %46, %47 : vector<4x8x8x32xf32>
    %49 = arith.addf %43, %48 : vector<4x8x8x32xf32>
    %c6 = arith.constant 6 : index
    %c0_49 = arith.constant 0 : index
    %50 = vector.load %arg4[%c6, %c0_49] : memref<9x32xf32, #tpu.memory_space<vmem>>, vector<1x32xf32>
    %51 = vector.shape_cast %50 : vector<1x32xf32> to vector<1x1x1x32xf32>
    %c0_50 = arith.constant 0 : index
    %c2_51 = arith.constant 2 : index
    %c0_52 = arith.constant 0 : index
    %c0_53 = arith.constant 0 : index
    %52 = vector.load %arg10[%c0_50, %c2_51, %c0_52, %c0_53] : memref<4x10x10x32xf32, #tpu.memory_space<vmem>>, vector<4x8x8x32xf32>
    %53 = vector.broadcast %51 : vector<1x1x1x32xf32> to vector<4x8x8x32xf32>
    %54 = arith.mulf %52, %53 : vector<4x8x8x32xf32>
    %55 = arith.addf %49, %54 : vector<4x8x8x32xf32>
    %c7 = arith.constant 7 : index
    %c0_54 = arith.constant 0 : index
    %56 = vector.load %arg4[%c7, %c0_54] : memref<9x32xf32, #tpu.memory_space<vmem>>, vector<1x32xf32>
    %57 = vector.shape_cast %56 : vector<1x32xf32> to vector<1x1x1x32xf32>
    %c0_55 = arith.constant 0 : index
    %c2_56 = arith.constant 2 : index
    %c1_57 = arith.constant 1 : index
    %c0_58 = arith.constant 0 : index
    %58 = vector.load %arg10[%c0_55, %c2_56, %c1_57, %c0_58] : memref<4x10x10x32xf32, #tpu.memory_space<vmem>>, vector<4x8x8x32xf32>
    %59 = vector.broadcast %57 : vector<1x1x1x32xf32> to vector<4x8x8x32xf32>
    %60 = arith.mulf %58, %59 : vector<4x8x8x32xf32>
    %61 = arith.addf %55, %60 : vector<4x8x8x32xf32>
    %c8 = arith.constant 8 : index
    %c0_59 = arith.constant 0 : index
    %62 = vector.load %arg4[%c8, %c0_59] : memref<9x32xf32, #tpu.memory_space<vmem>>, vector<1x32xf32>
    %63 = vector.shape_cast %62 : vector<1x32xf32> to vector<1x1x1x32xf32>
    %c0_60 = arith.constant 0 : index
    %c2_61 = arith.constant 2 : index
    %c2_62 = arith.constant 2 : index
    %c0_63 = arith.constant 0 : index
    %64 = vector.load %arg10[%c0_60, %c2_61, %c2_62, %c0_63] : memref<4x10x10x32xf32, #tpu.memory_space<vmem>>, vector<4x8x8x32xf32>
    %65 = vector.broadcast %63 : vector<1x1x1x32xf32> to vector<4x8x8x32xf32>
    %66 = arith.mulf %64, %65 : vector<4x8x8x32xf32>
    %67 = arith.addf %61, %66 : vector<4x8x8x32xf32>
    %68 = vector.shape_cast %67 : vector<4x8x8x32xf32> to vector<256x32xf32>
    %c0_64 = arith.constant 0 : index
    %c0_65 = arith.constant 0 : index
    %69 = vector.load %arg5[%c0_64, %c0_65] : memref<1x32xf32, #tpu.memory_space<vmem>>, vector<1x32xf32>
    %70 = vector.broadcast %69 : vector<1x32xf32> to vector<256x32xf32>
    %71 = arith.addf %68, %70 : vector<256x32xf32>
    %cst_66 = arith.constant 0.000000e+00 : f32
    %72 = vector.broadcast %cst_66 : f32 to vector<256x32xf32>
    %73 = arith.maximumf %71, %72 : vector<256x32xf32>
    %74 = arith.truncf %73 : vector<256x32xf32> to vector<256x32xbf16>
    %c0_67 = arith.constant 0 : index
    %c0_68 = arith.constant 0 : index
    %75 = vector.load %arg6[%c0_67, %c0_68] : memref<32x128xbf16, #tpu.memory_space<vmem>>, vector<32x128xbf16>
    %cst_69 = arith.constant dense<0.000000e+00> : vector<256x128xf32>
    %76 = tpu.matmul %74, %75, %cst_69 {dimension_numbers = #tpu.dot_dimension_numbers<[1], [0], [0], [1], [0, 0, 1, 1], [], []>} : vector<256x32xbf16>, vector<32x128xbf16>, vector<256x128xf32> -> vector<256x128xf32>
    %c0_70 = arith.constant 0 : index
    %c0_71 = arith.constant 0 : index
    %77 = vector.load %arg7[%c0_70, %c0_71] : memref<1x128xf32, #tpu.memory_space<vmem>>, vector<1x128xf32>
    %78 = vector.broadcast %77 : vector<1x128xf32> to vector<256x128xf32>
    %79 = arith.addf %76, %78 : vector<256x128xf32>
    %c0_72 = arith.constant 0 : index
    %c0_73 = arith.constant 0 : index
    %80 = vector.load %arg8[%c0_72, %c0_73] : memref<64x128xbf16, #tpu.memory_space<vmem>>, vector<64x128xbf16>
    %cst_74 = arith.constant dense<0.000000e+00> : vector<256x128xf32>
    %81 = tpu.matmul %1, %80, %cst_74 {dimension_numbers = #tpu.dot_dimension_numbers<[1], [0], [0], [1], [0, 0, 1, 1], [], []>} : vector<256x64xbf16>, vector<64x128xbf16>, vector<256x128xf32> -> vector<256x128xf32>
    %82 = arith.addf %79, %81 : vector<256x128xf32>
    %cst_75 = arith.constant 0.000000e+00 : f32
    %83 = vector.broadcast %cst_75 : f32 to vector<256x128xf32>
    %84 = arith.maximumf %82, %83 : vector<256x128xf32>
    %85 = vector.shape_cast %84 : vector<256x128xf32> to vector<4x8x8x128xf32>
    %c0_76 = arith.constant 0 : index
    %c0_77 = arith.constant 0 : index
    %c0_78 = arith.constant 0 : index
    %c0_79 = arith.constant 0 : index
    %86 = vector.load %arg9[%c0_76, %c0_77, %c0_78, %c0_79] : memref<4x8x8x128xf32, #tpu.memory_space<vmem>>, vector<4x8x8x128xf32>
    tpu.vector_store %arg9[%c0_76, %c0_77, %c0_78, %c0_79], %85 {strides = array<i32>} : memref<4x8x8x128xf32, #tpu.memory_space<vmem>>, vector<4x8x8x128xf32>,
    return
  }
  func.func @transform_0(%arg0: i32) -> (i32, i32, i32, i32) {
    %c0_i32 = arith.constant 0 : i32
    %c0_i32_0 = arith.constant 0 : i32
    %c0_i32_1 = arith.constant 0 : i32
    %c0_i32_2 = arith.constant 0 : i32
    return %arg0, %c0_i32, %c0_i32_0, %c0_i32_1 : i32, i32, i32, i32
  }
  func.func @transform_1(%arg0: i32) -> (i32, i32) {
    %c0_i32 = arith.constant 0 : i32
    %c0_i32_0 = arith.constant 0 : i32
    %c0_i32_1 = arith.constant 0 : i32
    return %c0_i32, %c0_i32_0 : i32, i32
  }
  func.func @transform_2(%arg0: i32) -> (i32, i32) {
    %c0_i32 = arith.constant 0 : i32
    %c0_i32_0 = arith.constant 0 : i32
    %c0_i32_1 = arith.constant 0 : i32
    return %c0_i32, %c0_i32_0 : i32, i32
  }
  func.func @transform_3(%arg0: i32) -> (i32, i32) {
    %c0_i32 = arith.constant 0 : i32
    %c0_i32_0 = arith.constant 0 : i32
    %c0_i32_1 = arith.constant 0 : i32
    return %c0_i32, %c0_i32_0 : i32, i32
  }
  func.func @transform_4(%arg0: i32) -> (i32, i32) {
    %c0_i32 = arith.constant 0 : i32
    %c0_i32_0 = arith.constant 0 : i32
    %c0_i32_1 = arith.constant 0 : i32
    return %c0_i32, %c0_i32_0 : i32, i32
  }
  func.func @transform_5(%arg0: i32) -> (i32, i32) {
    %c0_i32 = arith.constant 0 : i32
    %c0_i32_0 = arith.constant 0 : i32
    %c0_i32_1 = arith.constant 0 : i32
    return %c0_i32, %c0_i32_0 : i32, i32
  }
  func.func @transform_6(%arg0: i32) -> (i32, i32) {
    %c0_i32 = arith.constant 0 : i32
    %c0_i32_0 = arith.constant 0 : i32
    %c0_i32_1 = arith.constant 0 : i32
    return %c0_i32, %c0_i32_0 : i32, i32
  }
  func.func @transform_7(%arg0: i32) -> (i32, i32) {
    %c0_i32 = arith.constant 0 : i32
    %c0_i32_0 = arith.constant 0 : i32
    %c0_i32_1 = arith.constant 0 : i32
    return %c0_i32, %c0_i32_0 : i32, i32
  }
  func.func @transform_8(%arg0: i32) -> (i32, i32, i32, i32) {
    %c0_i32 = arith.constant 0 : i32
    %c0_i32_0 = arith.constant 0 : i32
    %c0_i32_1 = arith.constant 0 : i32
    %c0_i32_2 = arith.constant 0 : i32
    return %arg0, %c0_i32, %c0_i32_0, %c0_i32_1 : i32, i32, i32, i32
  }
}

</mosaic_0001>

<bundles_post_ra>
// kernel: tpu_custom_call.1
= control target key start
LH: loop header
LB: loop body
LE: loop exit
PB: predicated region body
PF: predicated region fallthrough
CT: control target
= control target key end

     0   :  { %s4202_s0 = inlined_call_operand.hbm [shape: bf16[8,8,8,64], index: 0, kind: input, shape index: {}]   ;;  %s4203_s1 = inlined_call_operand.vmem [shape: bf16[64,32], index: 1, kind: input, shape index: {}]   ;;  %s4204_s2 = inlined_call_operand.vmem [shape: f32[1,32], index: 2, kind: input, shape index: {}]   ;;  %s4205_s3 = inlined_call_operand.vmem [shape: f32[9,32], index: 3, kind: input, shape index: {}]   ;;  %s4206_s4 = inlined_call_operand.vmem [shape: f32[1,32], index: 4, kind: input, shape index: {}]   ;;  %s4207_s5 = inlined_call_operand.hbm [shape: bf16[32,128], index: 5, kind: input, shape index: {}]   ;;  %s4208_s6 = inlined_call_operand.vmem [shape: f32[1,128], index: 6, kind: input, shape index: {}]   ;;  %s4209_s7 = inlined_call_operand.vmem [shape: bf16[64,128], index: 7, kind: input, shape index: {}]   ;;  %s4210_s8 = inlined_call_operand.hbm [shape: f32[8,8,8,128], index: 8, kind: output, shape index: {}]  }
   0x1   :  { %4219 = sst [smem:[#allocation13_spill]] %s4207_s5 }
   0x2   :  { %13 = vsyncpa [#allocation4], 0 }
   0x3   :  { %15 = vsyncpa [#allocation4 + $0x1], 0 }
   0x4   :  { %16 = vsyncpa [#allocation7], 0 }
   0x5   :  { %17 = vsyncpa [#allocation5], 0 }
   0x6   :  { %19 = vsyncpa [#allocation5 + $0x1], 0  ;;  %s3045_s27 = smov 0   ;;  %s3047_s28 = smov 0  }
   0x7   :  { %s3049_s29 = smov 0   ;;  %s3051_s30 = smov 0  }
   0x8 LB: > { %s3066_s9 = sadd.s32 4294967295, %s2990_s30   ;;  %s2467_s10 = sadd.s32 4294967294, %s2990_s30   ;;  %s2990_s30 = sphi %s3051_s30, %s4238_s30   ;;  %s2986_s29 = sphi %s3049_s29, %s4241_s29   ;;  %s2982_s28 = sphi %s3047_s28, %s4240_s28   ;;  %s2978_s27 = sphi %s3045_s27, %s4239_s27  }
   0x9   : > { %p45_p0 = scmp.ne.s32.totalorder %s2982_s28, %s2978_s27  ;;  %p4214_p1 = scmp.eq.s32.totalorder %s3066_s9, 0 }
   0xa   : > { %p222_p3 = scmp.eq.s32.totalorder %s2467_s10, 1  ;;  %p2468_p5 = scmp.ge.s32.totalorder %s2990_s30, 1 }
   0xb   : > { %p3075_p4 = por %p4214_p1, %p45_p0  ;;  %p229_p7 = scmp.lt.s32.totalorder %s2990_s30, 3 }
   0xc   : > { %p3080_p6 = por %p222_p3, %p45_p0  ;;  %s2992_s14 = smov [#allocation6]  }
   0xd   : > { %s4220_s11 = scalar_select %p3075_p4, 1, 0 }
   0xe   : > { %s4221_s12 = scalar_select %p3080_p6, 1, 0 }
   0xf   : > { %p3085_p8 = pnand %p2468_p5, %p229_p7  ;;  %s253_s15 = sshll.u32 %s2992_s14, 4  ;;  %s254_s15 = int_to_ptr.vmem [resolvable:$true] %s253_s15 }
  0x10   : > { %s3099_s17 = sadd.s32 1, %s2990_s30   ;;  %s32_s18 = sadd.s32 1, %s2986_s29 }
  0x11   : > { %s4222_s13 = scalar_select %p3085_p8, 1, 0 }
  0x12   : > { %p2761_p9 = pneg %p3085_p8  ;;  %4224 = sst [smem:[#allocation12_spill]] %s3099_s17 }
  0x13   : > { %s29_s19 = ssub.s32 %s2990_s30, %s3099_s17  ;;  %s2879_s20 = scalar_lea.vmem %s254_s15, 256 }
  0x14   : > { %p3094_p11 = pnand %p2761_p9, %p4214_p1  ;;  %p2880_p13 = scmp.ne.s32.totalorder %s254_s15, %s2879_s20 }
  0x15   : > { %p2887_p5 = scmp.lt.s32.totalorder %s254_s15, %s254_s15  ;;  %p2888_p7 = scmp.lt.s32.totalorder %s2879_s20, %s2879_s20 }
  0x16   : > { %p2870_p12 = pneg %p3094_p11 }
  0x17   : > { %p2889_p10 = por %p2888_p7, %p2887_p5 }
  0x18   : > { %p2882_p0 = pnand %p2880_p13, %p2870_p12 }
  0x1a   : > { %p2883_p3 = pneg %p2882_p0 }
  0x1c   : > { %p2890_p2 = pnand %p2889_p10, %p2883_p3 }
  0x1e   : > { %2893 = shalt.err (!%p2890_p2)
}
  0x1f   : > { %s4213_s21 = smov 64   ;;  %s4215_s22 = smov 4  }
  0x20   : > { %s4225_s5 = sld [smem:[#allocation13_spill]]  ;;  %p30_p2 = scmp.eq.s32.totalorder %s29_s19, 0 }
  0x21   : > { %p39_p9 = scmp.ne.s32.totalorder %s2986_s29, %s2982_s28  ;;  %p40_p10 = scmp.eq.s32.totalorder %s2990_s30, 0 }
  0x22   : > { %p2774_p12 = scmp.lt.s32.totalorder %s2990_s30, 2  ;;  %p4226_p0 = scmp.eq.s32.totalorder %s3066_s9, 1 }
  0x23   : > { %s3119_s25 = scalar_select %p30_p2, %s2986_s29, %s32_s18  }
  0x24   : > { %p41_p13 = por %p40_p10, %p39_p9  ;;  %p3123_p3 = por %p4226_p0, %p39_p9 }
  0x25   : > { %s273_s10 = sand.u32 1, %s2986_s29   ;;  %s2572_s14 = sshll.u32 %s2990_s30, 11 }
  0x26   : > { %2764 = dma.hbm_to_vmem [thread:$0]  (!%p3094_p11), %s4225_s5, 256, %s254_s15, [#allocation7], %s4213_s21, %s4213_s21, %s4215_s22  }
  0x27   : > { %s4227_s26 = scalar_select %p3123_p3, 1, 0 }
  0x28   : > { %s2471_s16 = sshll.u32 %s273_s10, 7  ;;  %s3132_s23 = scalar_lea.hbm %s4202_s0, %s2572_s14 }
  0x29   : > { %s277_s15 = scalar_lea.vmem [#allocation3], %s2471_s16  ;;  %p3134_p11 = pnand %p2774_p12, %p41_p13 }
  0x2a   : > { %s285_s18 = sshll.u32 %s277_s15, 4  ;;  %s3140_s24 = scalar_lea.sflag [#allocation4], %s273_s10  ;;  %s3138_s18 = int_to_ptr.vmem [resolvable:$true] %s285_s18 }
  0x2b   : > { %s2894_s21 = scalar_lea.hbm %s3132_s23, 2048  ;;  %p2896_p7 = pneg %p3134_p11 }
  0x2c   : > { %p2895_p5 = scmp.ne.s32.totalorder %s3132_s23, %s2894_s21  ;;  %s2899_s16 = scalar_lea.hbm %s4202_s0, 4096 }
  0x2d   : > { %p2900_p10 = scmp.lt.s32.totalorder %s3132_s23, %s4202_s0  ;;  %p2901_p12 = scmp.lt.s32.totalorder %s2899_s16, %s2894_s21 }
  0x2e   : > { %p2897_p2 = pnand %p2896_p7, %p2895_p5 }
  0x2f   : > { %p2902_p13 = por %p2901_p12, %p2900_p10 }
  0x30   : > { %p2898_p9 = pneg %p2897_p2 }
  0x32   : > { %p2903_p0 = pnand %p2902_p13, %p2898_p9 }
  0x34   : > { %2906 = shalt.err (!%p2903_p0)
}
  0x35   : > { %s2907_s10 = scalar_lea.vmem %s3138_s18, 2048  ;;  %s2995_s22 = smov [#allocation3]  }
  0x36   : > { %p2908_p1 = scmp.ne.s32.totalorder %s3138_s18, %s2907_s10  ;;  %s2912_s5 = sshll.u32 %s2995_s22, 4  ;;  %s2913_s5 = int_to_ptr.vmem [resolvable:$false] %s2912_s5 }
  0x37   : > { %s2914_s17 = scalar_lea.vmem %s2913_s5, 4096  ;;  %p2915_p2 = scmp.lt.s32.totalorder %s3138_s18, %s2913_s5 }
  0x38   : > { %p2910_p6 = pnand %p2908_p1, %p2896_p7  ;;  %p2916_p3 = scmp.lt.s32.totalorder %s2914_s17, %s2907_s10 }
  0x3a   : > { %p2911_p5 = pneg %p2910_p6  ;;  %p2917_p4 = por %p2916_p3, %p2915_p2 }
  0x3c   : > { %p2918_p8 = pnand %p2917_p4, %p2911_p5 }
  0x3e   : > { %2921 = shalt.err (!%p2918_p8)
}
  0x3f   : > { %s4229_s21 = smov 4   ;;  %s4230_s14 = smov 64  }
  0x40   : > { %2768 = dma.hbm_to_vmem [thread:$0]  (!%p3134_p11), %s3132_s23, 2048, %s3138_s18, %s3140_s24, %s4230_s14, %s4230_s14, %s4229_s21  }
  0x41   : > { %p4231_p1 = scmp.ne.s32.totalorder %s4222_s13, 0 }
  0x42   : > { %s3167_s22 = sand.u32 (!%p4231_p1), 1, %s2982_s28   ;;  %p4232_p4 = scmp.ne.s32.totalorder (!%p4231_p1), %s4220_s11, 0 }
  0x43   : > { %297 = sbr.rel (%p4231_p1) target bundleno = 753 (0x2f1), region = 52  ;;  %s2476_s5 = sshll.u32 (!%p4231_p1), %s3167_s22, 7 }
  0x44   : > { %s300_s16 = scalar_lea.sflag (!%p4231_p1), [#allocation4], %s3167_s22  ;;  %s3171_s20 = scalar_lea.vmem (!%p4231_p1), [#allocation3], %s2476_s5 }
  0x48   : > { %2965 = dma.done.wait (%p4232_p4), %s300_s16, 2048  }
  0x49   : > { %2967 = vsyncadd (%p4232_p4), %s300_s16, 4294965248  ;;  %p4233_p6 = scmp.eq.s32.totalorder %s3066_s9, 0 }
  0x4b   : > { %2969 = dma.done.wait (%p4233_p6), [#allocation7], 256   ;;  %p4234_p8 = pmov %p4233_p6 }
  0x4c   : > { %v2815_v0 = vld [vmem:[%s4203_s1 + $0x18] sm:$0xff]   ;;  %v2816_v1 = vld [vmem:[%s4203_s1 + $0x10] sm:$0xff]   ;;  %v2817_v2 = vld [vmem:[%s4203_s1 + $0x8] sm:$0xff]   ;;  %vm494_vm0 = vcmask 523264   ;;  %vm736_vm1 = vcmask 261120   ;;  %vm738_vm2 = vcmask 254976  }
  0x4d   : > { %2971 = vsyncadd (%p4234_p8), [#allocation7], 4294967040  ;;  %2633 = vmatprep.subr.bf16.mxu0 %v2815_v0  ;;  %v2819_v3 = vld [vmem:[%s3171_s20] sm:$0xff]   ;;  %v2820_v5 = vld [vmem:[%s3171_s20 + $0x8] sm:$0xff]   ;;  %v2996_v20 = vmov 0.0   ;;  %s2478_s21 = sshll.u32 %s3167_s22, 8 }
  0x4e   : > { %2634 = vmatpush3.bf16.msra.mxu0 %v2815_v0  ;;  %2641 = vmatprep.mubr.msk.bf16.mxu0 %vm494_vm0, %v2819_v3  ;;  %v2818_v4 = vld [vmem:[%s4203_s1] sm:$0xff]   ;;  %v2821_v6 = vld [vmem:[%s3171_s20 + $0x10] sm:$0xff]   ;;  %v2822_v7 = vld [vmem:[%s3171_s20 + $0x18] sm:$0xff]   ;;  %744 = vst.msk [vmem:[#allocation2 + $0x30] sm:$0xff] %vm736_vm1, %v2996_v20  ;;  %s4070_s14 = scalar_lea.vmem [#allocation8], %s2478_s21  ;;  %s2574_s5 = sshll.u32 %s3066_s9, 12 }
  0x4f   : > { %2635 = vmatprep.subr.bf16.mxu0 %v2816_v1  ;;  %v2823_v8 = vld [vmem:[%s3171_s20 + $0x20] sm:$0xff]   ;;  %v2824_v9 = vld [vmem:[%s3171_s20 + $0x28] sm:$0xff]   ;;  %v2825_v10 = vld [vmem:[%s3171_s20 + $0x30] sm:$0xff]   ;;  %745 = vst.msk [vmem:[#allocation2 + $0x38] sm:$0x3] %vm738_vm2, %v2996_v20  ;;  %s2384_s16 = sshll.u32 %s4070_s14, 4  ;;  %s4155_s18 = scalar_lea.hbm %s4210_s8, %s2574_s5  ;;  %s4157_s16 = int_to_ptr.vmem [resolvable:$true] %s2384_s16 }
  0x50   : > { %v2826_v11 = vld [vmem:[%s3171_s20 + $0x38] sm:$0xff]   ;;  %v2827_v12 = vld [vmem:[%s3171_s20 + $0x40] sm:$0xff]   ;;  %v2828_v13 = vld [vmem:[%s3171_s20 + $0x48] sm:$0xff]   ;;  %737 = vst.msk [vmem:[#allocation2] sm:$0xff] %vm736_vm1, %v2996_v20  ;;  %s2370_s19 = scalar_lea.sflag [#allocation5], %s3167_s22  ;;  %s2922_s9 = scalar_lea.vmem %s4157_s16, 4096 }
  0x51   : > { %v2829_v14 = vld [vmem:[%s3171_s20 + $0x50] sm:$0xff]   ;;  %v2830_v15 = vld [vmem:[%s3171_s20 + $0x58] sm:$0xff]   ;;  %v2831_v16 = vld [vmem:[%s3171_s20 + $0x60] sm:$0xff]   ;;  %739 = vst.msk [vmem:[#allocation2 + $0x8] sm:$0x3] %vm738_vm2, %v2996_v20  ;;  %p2923_p3 = scmp.ne.s32.totalorder %s4157_s16, %s2922_s9  ;;  %p4235_p11 = scmp.ne.s32.totalorder %s4227_s26, 0 }
  0x52   : > { %2636 = vmatpush3.bf16.msra.mxu0 %v2816_v1  ;;  %v2832_v17 = vld [vmem:[%s3171_s20 + $0x68] sm:$0xff]   ;;  %v2833_v18 = vld [vmem:[%s3171_s20 + $0x70] sm:$0xff]   ;;  %v2834_v19 = vld [vmem:[%s3171_s20 + $0x78] sm:$0xff]   ;;  %740 = vst.msk [vmem:[#allocation2 + $0x10] sm:$0xff] %vm736_vm1, %v2996_v20  ;;  %s2997_s11 = smov [#allocation8]  }
  0x53   : > { %2637 = vmatprep.subr.bf16.mxu0 %v2817_v2  ;;  %741 = vst.msk [vmem:[#allocation2 + $0x18] sm:$0x3] %vm738_vm2, %v2996_v20  ;;  %743 = vst.msk [vmem:[#allocation2 + $0x28] sm:$0x3] %vm738_vm2, %v2996_v20  ;;  %v2835_v21 = vld [vmem:[#allocation6 + $0x8] sm:$0xff]   ;;  %v2836_v22 = vld [vmem:[#allocation6] sm:$0xff]   ;;  %p2924_p7 = pnand %p2923_p3, %p4235_p11 }
  0x54   : > { %742 = vst.msk [vmem:[#allocation2 + $0x20] sm:$0xff] %vm736_vm1, %v2996_v20  ;;  %746 = vst.msk [vmem:[#allocation2 + $0x40] sm:$0xff] %vm736_vm1, %v2996_v20  ;;  %2749 = vmatprep.subr.bf16.mxu1 %v2835_v21  ;;  %v2837_v23 = vld [vmem:[%s4209_s7 + $0x18] sm:$0xff]   ;;  %v3391_v24 = vld [vmem:[%s4204_s2] ss:$0 sm:$0xff]  ;;  %s2926_s24 = sshll.u32 %s2997_s11, 4  ;;  %s2927_s24 = int_to_ptr.vmem [resolvable:$false] %s2926_s24 }
  0x55   : > { %747 = vst.msk [vmem:[#allocation2 + $0x48] sm:$0x3] %vm738_vm2, %v2996_v20  ;;  %749 = vst.msk [vmem:[#allocation2 + $0x58] sm:$0x3] %vm738_vm2, %v2996_v20  ;;  %2751 = vmatpush3.bf16.msra.mxu1 %v2835_v21  ;;  %v3396_v25 = vld [vmem:[%s4205_s3] ss:$0 sm:$0xff]  ;;  %p2925_p9 = pneg %p2924_p7  ;;  %p2929_p10 = scmp.lt.s32.totalorder %s4157_s16, %s2927_s24 }
  0x56   : > { %2638 = vmatpush3.bf16.msra.mxu0 %v2817_v2  ;;  %748 = vst.msk [vmem:[#allocation2 + $0x50] sm:$0xff] %vm736_vm1, %v2996_v20  ;;  %750 = vst.msk [vmem:[#allocation2 + $0x60] sm:$0xff] %vm736_vm1, %v2996_v20  ;;  %2750 = vmatprep.subr.bf16.mxu1 %v2836_v22  ;;  %v3401_v27 = vld [vmem:[%s4205_s3 + $0x1] ss:$0 sm:$0xff]  ;;  %v3409_v38 = vld [vmem:[%s4205_s3 + $0x2] ss:$0 sm:$0xff] }
  0x57   : > { %2639 = vmatprep.subr.bf16.mxu0 %v2818_v4  ;;  %751 = vst.msk [vmem:[#allocation2 + $0x68] sm:$0x3] %vm738_vm2, %v2996_v20  ;;  %753 = vst.msk [vmem:[#allocation2 + $0x78] sm:$0x3] %vm738_vm2, %v2996_v20  ;;  %v852_v26 = vld [vmem:[#allocation2] sm:$0xff]  ;;  %s2928_s15 = scalar_lea.vmem %s2927_s24, 8192 }
  0x58   : > { %752 = vst.msk [vmem:[#allocation2 + $0x70] sm:$0xff] %vm736_vm1, %v2996_v20  ;;  %754 = vst.msk [vmem:[#allocation2 + $0x80] sm:$0xff] %vm736_vm1, %v2996_v20  ;;  %v953_v28 = vld [vmem:[#allocation2 + $0x1] sm:$0xff]  ;;  %v888_v35 = vmul.f32 %v3396_v25, %v852_v26  ;;  %p2930_p12 = scmp.lt.s32.totalorder %s2928_s15, %s2922_s9 }
  0x59   : > { %755 = vst.msk [vmem:[#allocation2 + $0x88] sm:$0x3] %vm738_vm2, %v2996_v20  ;;  %757 = vst.msk [vmem:[#allocation2 + $0x98] sm:$0x3] %vm738_vm2, %v2996_v20  ;;  %2752 = vmatpush3.bf16.msra.mxu1 %v2836_v22  ;;  %v989_v36 = vmul.f32 %v3401_v27, %v953_v28  ;;  %v1054_v39 = vld [vmem:[#allocation2 + $0x2] sm:$0xff] }
  0x5a   : > { %2640 = vmatpush3.bf16.msra.mxu0 %v2818_v4  ;;  %756 = vst.msk [vmem:[#allocation2 + $0x90] sm:$0xff] %vm736_vm1, %v2996_v20  ;;  %758 = vst.msk [vmem:[#allocation2 + $0xa0] sm:$0xff] %vm736_vm1, %v2996_v20  ;;  %2709 = vmatprep.subr.bf16.mxu1 %v2837_v23  ;;  %v1090_v52 = vmul.f32 %v3409_v38, %v1054_v39  ;;  %v3426_v3 = vld [vmem:[%s4205_s3 + $0x6] ss:$0 sm:$0xff]  ;;  %v3431_v4 = vld [vmem:[%s4205_s3 + $0x7] ss:$0 sm:$0xff]  ;;  %p2931_p13 = por %p2930_p12, %p2929_p10 }
  0x5b   : > { %759 = vst.msk [vmem:[#allocation2 + $0xa8] sm:$0x3] %vm738_vm2, %v2996_v20  ;;  %761 = vst.msk [vmem:[#allocation2 + $0xb8] sm:$0x3] %vm738_vm2, %v2996_v20  ;;  %2673 = vmatprep.subr.bf16.mxu0 %v2835_v21  ;;  %v1021_v51 = vadd.f32 %v989_v36, %v888_v35  ;;  %v3481_v39 = vld [vmem:[%s4205_s3 + $0x3] ss:$0 sm:$0xff] }
  0x5c   : > { %760 = vst.msk [vmem:[#allocation2 + $0xb0] sm:$0xff] %vm736_vm1, %v2996_v20  ;;  %762 = vst.msk [vmem:[#allocation2 + $0xc0] sm:$0xff] %vm736_vm1, %v2996_v20  ;;  %p2932_p0 = pnand %p2931_p13, %p2925_p9 }
  0x5d   : > { %2642 = vmatmul.mubr.msk.bf16.vlgmr.msra.gmra.mxu0 %vm494_vm0, %v2820_v5  ;;  %763 = vst.msk [vmem:[#allocation2 + $0xc8] sm:$0x3] %vm738_vm2, %v2996_v20  ;;  %765 = vst.msk [vmem:[#allocation2 + $0xd8] sm:$0x3] %vm738_vm2, %v2996_v20 }
  0x5e   : > { %2645 = vmatprep.mubr.msk.bf16.mxu0 %vm494_vm0, %v2821_v6  ;;  %764 = vst.msk [vmem:[#allocation2 + $0xd0] sm:$0xff] %vm736_vm1, %v2996_v20  ;;  %766 = vst.msk [vmem:[#allocation2 + $0xe0] sm:$0xff] %vm736_vm1, %v2996_v20  ;;  %2674 = vmatpush3.bf16.msra.mxu0 %v2835_v21 }
  0x5f   : > { %767 = vst.msk [vmem:[#allocation2 + $0xe8] sm:$0x3] %vm738_vm2, %v2996_v20  ;;  %769 = vst.msk [vmem:[#allocation2 + $0xf8] sm:$0x3] %vm738_vm2, %v2996_v20  ;;  %2675 = vmatprep.subr.bf16.mxu0 %v2836_v22 }
  0x60   : > { %768 = vst.msk [vmem:[#allocation2 + $0xf0] sm:$0xff] %vm736_vm1, %v2996_v20  ;;  %770 = vst.msk [vmem:[#allocation2 + $0x100] sm:$0xff] %vm736_vm1, %v2996_v20 }
  0x61   : > { %771 = vst.msk [vmem:[#allocation2 + $0x108] sm:$0x3] %vm738_vm2, %v2996_v20  ;;  %773 = vst.msk [vmem:[#allocation2 + $0x118] sm:$0x3] %vm738_vm2, %v2996_v20  ;;  %v860_v29 = vld [vmem:[#allocation2 + $0xa0] sm:$0xff]  ;;  %v1466_v54 = vld [vmem:[#allocation2 + $0x90] sm:$0xff] }
  0x62   : > { %772 = vst.msk [vmem:[#allocation2 + $0x110] sm:$0xff] %vm736_vm1, %v2996_v20  ;;  %774 = vst.msk [vmem:[#allocation2 + $0x120] sm:$0xff] %vm736_vm1, %v2996_v20  ;;  %2676 = vmatpush3.bf16.msra.mxu0 %v2836_v22  ;;  %v961_v30 = vld [vmem:[#allocation2 + $0xa1] sm:$0xff]  ;;  %v896_v40 = vmul.f32 %v3396_v25, %v860_v29  ;;  %v1567_v61 = vld [vmem:[#allocation2 + $0x91] sm:$0xff] }
  0x63   : > { %775 = vst.msk [vmem:[#allocation2 + $0x128] sm:$0x3] %vm738_vm2, %v2996_v20  ;;  %777 = vst.msk [vmem:[#allocation2 + $0x138] sm:$0x3] %vm738_vm2, %v2996_v20  ;;  %v997_v41 = vmul.f32 %v3401_v27, %v961_v30  ;;  %v1062_v44 = vld [vmem:[#allocation2 + $0xa2] sm:$0xff]  ;;  %v1668_v62 = vld [vmem:[#allocation2 + $0x92] sm:$0xff] }
  0x64   : > { %776 = vst.msk [vmem:[#allocation2 + $0x130] sm:$0xff] %vm736_vm1, %v2996_v20  ;;  %778 = vst.msk [vmem:[#allocation2 + $0x140] sm:$0xff] %vm736_vm1, %v2996_v20  ;;  %v1098_v56 = vmul.f32 %v3409_v38, %v1062_v44 }
  0x65   : > { %2646 = vmatmul.mubr.msk.bf16.gmra.mxu0 %vm494_vm0, %v2822_v7  ;;  %779 = vst.msk [vmem:[#allocation2 + $0x148] sm:$0x3] %vm738_vm2, %v2996_v20  ;;  %781 = vst.msk [vmem:[#allocation2 + $0x158] sm:$0x3] %vm738_vm2, %v2996_v20  ;;  %v1029_v55 = vadd.f32 %v997_v41, %v896_v40 }
  0x66   : > { %2649 = vmatprep.mubr.msk.bf16.mxu0 %vm494_vm0, %v2823_v8  ;;  %780 = vst.msk [vmem:[#allocation2 + $0x150] sm:$0xff] %vm736_vm1, %v2996_v20  ;;  %782 = vst.msk [vmem:[#allocation2 + $0x160] sm:$0xff] %vm736_vm1, %v2996_v20 }
  0x67   : > { %783 = vst.msk [vmem:[#allocation2 + $0x168] sm:$0x3] %vm738_vm2, %v2996_v20  ;;  %785 = vst.msk [vmem:[#allocation2 + $0x178] sm:$0x3] %vm738_vm2, %v2996_v20 }
  0x68   : > { %784 = vst.msk [vmem:[#allocation2 + $0x170] sm:$0xff] %vm736_vm1, %v2996_v20  ;;  %786 = vst.msk [vmem:[#allocation2 + $0x180] sm:$0xff] %vm736_vm1, %v2996_v20 }
  0x69   : > { %787 = vst.msk [vmem:[#allocation2 + $0x188] sm:$0x3] %vm738_vm2, %v2996_v20  ;;  %789 = vst.msk [vmem:[#allocation2 + $0x198] sm:$0x3] %vm738_vm2, %v2996_v20 }
  0x6a   : > { %788 = vst.msk [vmem:[#allocation2 + $0x190] sm:$0xff] %vm736_vm1, %v2996_v20  ;;  %790 = vst.msk [vmem:[#allocation2 + $0x1a0] sm:$0xff] %vm736_vm1, %v2996_v20 }
  0x6b   : > { %791 = vst.msk [vmem:[#allocation2 + $0x1a8] sm:$0x3] %vm738_vm2, %v2996_v20  ;;  %793 = vst.msk [vmem:[#allocation2 + $0x1b8] sm:$0x3] %vm738_vm2, %v2996_v20  ;;  %v868_v32 = vld [vmem:[#allocation2 + $0x140] sm:$0xff]  ;;  %v1474_v63 = vld [vmem:[#allocation2 + $0x130] sm:$0xff] }
  0x6c   : > { %792 = vst.msk [vmem:[#allocation2 + $0x1b0] sm:$0xff] %vm736_vm1, %v2996_v20  ;;  %794 = vst.msk [vmem:[#allocation2 + $0x1c0] sm:$0xff] %vm736_vm1, %v2996_v20  ;;  %v969_v33 = vld [vmem:[#allocation2 + $0x141] sm:$0xff]  ;;  %v904_v45 = vmul.f32 %v3396_v25, %v868_v32  ;;  %v1575_v5 = vld [vmem:[#allocation2 + $0x131] sm:$0xff] }
  0x6d   : > { %2650 = vmatmul.mubr.msk.bf16.gmra.mxu0 %vm494_vm0, %v2824_v9  ;;  %795 = vst.msk [vmem:[#allocation2 + $0x1c8] sm:$0x3] %vm738_vm2, %v2996_v20  ;;  %797 = vst.msk [vmem:[#allocation2 + $0x1d8] sm:$0x3] %vm738_vm2, %v2996_v20  ;;  %v1005_v46 = vmul.f32 %v3401_v27, %v969_v33  ;;  %v1070_v48 = vld [vmem:[#allocation2 + $0x142] sm:$0xff]  ;;  %v3459_v23 = vmul.f32 %v3431_v4, %v1575_v5 }
  0x6e   : > { %2653 = vmatprep.mubr.msk.bf16.mxu0 %vm494_vm0, %v2825_v10  ;;  %796 = vst.msk [vmem:[#allocation2 + $0x1d0] sm:$0xff] %vm736_vm1, %v2996_v20  ;;  %798 = vst.msk [vmem:[#allocation2 + $0x1e0] sm:$0xff] %vm736_vm1, %v2996_v20  ;;  %v1106_v1 = vmul.f32 %v3409_v38, %v1070_v48  ;;  %v1122_v10 = vadd.f32 %v1090_v52, %v1021_v51 }
  0x6f   : > { %799 = vst.msk [vmem:[#allocation2 + $0x1e8] sm:$0x3] %vm738_vm2, %v2996_v20  ;;  %801 = vst.msk [vmem:[#allocation2 + $0x1f8] sm:$0x3] %vm738_vm2, %v2996_v20  ;;  %v1037_v0 = vadd.f32 %v1005_v46, %v904_v45 }
  0x70   : > { %800 = vst.msk [vmem:[#allocation2 + $0x1f0] sm:$0xff] %vm736_vm1, %v2996_v20  ;;  %802 = vst.msk [vmem:[#allocation2 + $0x200] sm:$0xff] %vm736_vm1, %v2996_v20 }
  0x71   : > { %803 = vst.msk [vmem:[#allocation2 + $0x208] sm:$0x3] %vm738_vm2, %v2996_v20  ;;  %805 = vst.msk [vmem:[#allocation2 + $0x218] sm:$0x3] %vm738_vm2, %v2996_v20  ;;  %v3461_v26 = vadd.f32 %v1106_v1, %v1037_v0 }
  0x72   : > { %804 = vst.msk [vmem:[#allocation2 + $0x210] sm:$0xff] %vm736_vm1, %v2996_v20  ;;  %806 = vst.msk [vmem:[#allocation2 + $0x220] sm:$0xff] %vm736_vm1, %v2996_v20 }
  0x73   : > { %807 = vst.msk [vmem:[#allocation2 + $0x228] sm:$0x3] %vm738_vm2, %v2996_v20  ;;  %809 = vst.msk [vmem:[#allocation2 + $0x238] sm:$0x3] %vm738_vm2, %v2996_v20 }
  0x74   : > { %808 = vst.msk [vmem:[#allocation2 + $0x230] sm:$0xff] %vm736_vm1, %v2996_v20  ;;  %810 = vst.msk [vmem:[#allocation2 + $0x240] sm:$0xff] %vm736_vm1, %v2996_v20 }
  0x75   : > { %2654 = vmatmul.mubr.msk.bf16.gmra.mxu0 %vm494_vm0, %v2826_v11  ;;  %811 = vst.msk [vmem:[#allocation2 + $0x248] sm:$0x3] %vm738_vm2, %v2996_v20  ;;  %813 = vst.msk [vmem:[#allocation2 + $0x258] sm:$0x3] %vm738_vm2, %v2996_v20  ;;  %v876_v57 = vld [vmem:[#allocation2 + $0x1e0] sm:$0xff] }
  0x76   : > { %2657 = vmatprep.mubr.msk.bf16.mxu0 %vm494_vm0, %v2827_v12  ;;  %812 = vst.msk [vmem:[#allocation2 + $0x250] sm:$0xff] %vm736_vm1, %v2996_v20  ;;  %814 = vst.msk [vmem:[#allocation2 + $0x260] sm:$0xff] %vm736_vm1, %v2996_v20  ;;  %v977_v58 = vld [vmem:[#allocation2 + $0x1e1] sm:$0xff]  ;;  %v912_v6 = vmul.f32 %v3396_v25, %v876_v57  ;;  %v3443_v12 = vmul.f32 %v3426_v3, %v1466_v54 }
  0x77   : > { %815 = vst.msk [vmem:[#allocation2 + $0x268] sm:$0x3] %vm738_vm2, %v2996_v20  ;;  %817 = vst.msk [vmem:[#allocation2 + $0x278] sm:$0x3] %vm738_vm2, %v2996_v20  ;;  %v1013_v7 = vmul.f32 %v3401_v27, %v977_v58  ;;  %v3440_v11 = vld [vmem:[%s4205_s3 + $0x8] ss:$0 sm:$0xff] }
  0x78   : > { %816 = vst.msk [vmem:[#allocation2 + $0x270] sm:$0xff] %vm736_vm1, %v2996_v20  ;;  %v1482_v20 = vld [vmem:[#allocation2 + $0x1d0] sm:$0xff]  ;;  %v3504_v54 = vld [vmem:[%s4205_s3 + $0x4] ss:$0 sm:$0xff] }
  0x79   : > { %v3469_v33 = vmul.f32 %v3426_v3, %v1482_v20 }
  0x7d   : > { %2658 = vmatmul.mubr.msk.bf16.gmra.mxu0 %vm494_vm0, %v2828_v13  ;;  %v1676_v13 = vld [vmem:[#allocation2 + $0x132] sm:$0xff] }
  0x7e   : > { %2661 = vmatprep.mubr.msk.bf16.mxu0 %vm494_vm0, %v2829_v14  ;;  %v1078_v14 = vld [vmem:[#allocation2 + $0x1e2] sm:$0xff]  ;;  %v3466_v32 = vmul.f32 %v3440_v11, %v1676_v13 }
  0x7f   : > { %v3474_v35 = vmul.f32 %v3409_v38, %v1078_v14 }
  0x85   : > { %2662 = vmatmul.mubr.msk.bf16.gmra.mxu0 %vm494_vm0, %v2830_v15 }
  0x86   : > { %2665 = vmatprep.mubr.msk.bf16.mxu0 %vm494_vm0, %v2831_v16  ;;  %v3446_v16 = vmul.f32 %v3431_v4, %v1567_v61 }
  0x8d   : > { %2666 = vmatmul.mubr.msk.bf16.gmra.mxu0 %vm494_vm0, %v2832_v17  ;;  %v3449_v17 = vmul.f32 %v3440_v11, %v1668_v62 }
  0x8e   : > { %2669 = vmatprep.mubr.msk.bf16.mxu0 %vm494_vm0, %v2833_v18  ;;  %v3451_v18 = vadd.f32 %v1098_v56, %v1029_v55  ;;  %v3509_v55 = vld [vmem:[%s4205_s3 + $0x5] ss:$0 sm:$0xff] }
  0x95   : > { %2670 = vmatmul.mubr.msk.bf16.gmra.mxu0 %vm494_vm0, %v2834_v19  ;;  %v3454_v19 = vmul.f32 %v3426_v3, %v1474_v63 }
 0x11d   : > { %v2643_v31 = vpop.f32.mrf.mxu0 }
 0x11e   : > { %v586_v34 = vadd.f32 %v2643_v31, %v3391_v24 }
 0x11f   : > { %v577_v37 = vpop.f32.mrf.mxu0 }
 0x120   : > { %v706_v42 = vmax.f32 %v586_v34, 0.0  ;;  %v578_v43 = vadd.f32 %v3391_v24, %v577_v37  ;;  %v3471_v34 = vadd.f32 %v1013_v7, %v912_v6 }
 0x121   : > { %v2644_v47 = vpop.f32.mrf.mxu0 }
 0x122   : > { %821 = vst.msk [vmem:[#allocation2 + $0x31] sm:$0xff] %vm736_vm1, %v706_v42  ;;  %v704_v49 = vmax.f32 %v578_v43, 0.0  ;;  %v589_v50 = vadd.f32 %v2644_v47, %v3391_v24 }
 0x123   : > { %v580_v53 = vpop.f32.mrf.mxu0 }
 0x124   : > { %819 = vst.msk [vmem:[#allocation2 + $0x11] sm:$0xff] %vm736_vm1, %v704_v49  ;;  %v707_v59 = vmax.f32 %v589_v50, 0.0  ;;  %v581_v60 = vadd.f32 %v3391_v24, %v580_v53 }
 0x125   : > { %v2647_v2 = vpop.f32.mrf.mxu0 }
 0x126   : > { %822 = vst.msk [vmem:[#allocation2 + $0x41] sm:$0xff] %vm736_vm1, %v707_v59  ;;  %v705_v8 = vmax.f32 %v581_v60, 0.0  ;;  %v602_v9 = vadd.f32 %v2647_v2, %v3391_v24 }
 0x127   : > { %v593_v15 = vpop.f32.mrf.mxu0 }
 0x128   : > { %820 = vst.msk [vmem:[#allocation2 + $0x21] sm:$0xff] %vm736_vm1, %v705_v8  ;;  %v710_v21 = vmax.f32 %v602_v9, 0.0  ;;  %v594_v22 = vadd.f32 %v3391_v24, %v593_v15 }
 0x129   : > { %v2648_v28 = vpop.f32.mrf.mxu0  ;;  %v1460_v29 = vld [vmem:[#allocation2 + $0x30] sm:$0xff] }
 0x12a   : > { %v1561_v30 = vld [vmem:[#allocation2 + $0x31] sm:$0xff]  ;;  %825 = vst.msk [vmem:[#allocation2 + $0x71] sm:$0xff] %vm736_vm1, %v710_v21  ;;  %v708_v36 = vmax.f32 %v594_v22, 0.0  ;;  %v605_v37 = vadd.f32 %v2648_v28, %v3391_v24  ;;  %v3484_v40 = vmul.f32 %v3426_v3, %v1460_v29  ;;  %v891_v47 = vmul.f32 %v3396_v25, %v1460_v29 }
 0x12b   : > { %v3463_v31 = vld [vmem:[#allocation2 + $0x32] sm:$0xff]  ;;  %v3487_v41 = vmul.f32 %v3431_v4, %v1561_v30  ;;  %v596_v42 = vpop.f32.mrf.mxu0  ;;  %v992_v48 = vmul.f32 %v3401_v27, %v1561_v30  ;;  %v1193_v9 = vmul.f32 %v3481_v39, %v1460_v29  ;;  %v3523_v14 = vmul.f32 %v3504_v54, %v1561_v30 }
 0x12c   : > { %v853_v43 = vld [vmem:[#allocation2 + $0x10] sm:$0xff]  ;;  %v3491_v46 = vmul.f32 %v3440_v11, %v3463_v31  ;;  %v1093_v49 = vmul.f32 %v3409_v38, %v3463_v31  ;;  %823 = vst.msk [vmem:[#allocation2 + $0x51] sm:$0xff] %vm736_vm1, %v708_v36  ;;  %v711_v50 = vmax.f32 %v605_v37, 0.0  ;;  %v597_v51 = vadd.f32 %v3391_v24, %v596_v42 }
 0x12d   : > { %v954_v44 = vld [vmem:[#allocation2 + $0x11] sm:$0xff]  ;;  %v889_v52 = vmul.f32 %v3396_v25, %v853_v43  ;;  %v2651_v56 = vpop.f32.mrf.mxu0  ;;  %v1191_v58 = vmul.f32 %v3481_v39, %v853_v43  ;;  %v3515_v61 = vld [vmem:[#allocation2 + $0x40] sm:$0xff]  ;;  %v1024_v1 = vadd.f32 %v992_v48, %v891_v47 }
 0x12e   : > { %v1055_v45 = vld [vmem:[#allocation2 + $0x12] sm:$0xff]  ;;  %v990_v53 = vmul.f32 %v3401_v27, %v954_v44  ;;  %v1292_v59 = vmul.f32 %v3504_v54, %v954_v44  ;;  %826 = vst.msk [vmem:[#allocation2 + $0x81] sm:$0xff] %vm736_vm1, %v711_v50  ;;  %v709_v62 = vmax.f32 %v597_v51, 0.0  ;;  %v618_v63 = vadd.f32 %v2651_v56, %v3391_v24 }
 0x12f   : > { %v1091_v57 = vmul.f32 %v3409_v38, %v1055_v45  ;;  %v1393_v60 = vmul.f32 %v3509_v55, %v1055_v45  ;;  %v609_v2 = vpop.f32.mrf.mxu0  ;;  %v1156_v5 = vld [vmem:[#allocation2 + $0x20] sm:$0xff]  ;;  %v1223_v6 = vadd.f32 %v1191_v58, %v1122_v10  ;;  %v1194_v13 = vmul.f32 %v3481_v39, %v3515_v61 }
 0x130   : > { %v1022_v0 = vadd.f32 %v990_v53, %v889_v52  ;;  %v1257_v7 = vld [vmem:[#allocation2 + $0x21] sm:$0xff]  ;;  %824 = vst.msk [vmem:[#allocation2 + $0x61] sm:$0xff] %vm736_vm1, %v709_v62  ;;  %v714_v15 = vmax.f32 %v618_v63, 0.0  ;;  %v610_v20 = vadd.f32 %v3391_v24, %v609_v2  ;;  %v1192_v22 = vmul.f32 %v3481_v39, %v1156_v5 }
 0x131   : > { %v1358_v8 = vld [vmem:[#allocation2 + $0x22] sm:$0xff]  ;;  %v2652_v28 = vpop.f32.mrf.mxu0  ;;  %v1293_v10 = vmul.f32 %v3504_v54, %v1257_v7  ;;  %v1324_v36 = vadd.f32 %v1292_v59, %v1223_v6  ;;  %v1495_v37 = vmul.f32 %v3426_v3, %v1156_v5  ;;  %v1596_v44 = vmul.f32 %v3431_v4, %v1257_v7 }
 0x132   : > { %v1123_v21 = vadd.f32 %v1091_v57, %v1022_v0  ;;  %v1394_v29 = vmul.f32 %v3509_v55, %v1358_v8  ;;  %829 = vst.msk [vmem:[#allocation2 + $0xd1] sm:$0xff] %vm736_vm1, %v714_v15  ;;  %v712_v30 = vmax.f32 %v610_v20, 0.0  ;;  %v621_v42 = vadd.f32 %v2652_v28, %v3391_v24  ;;  %v3534_v45 = vld [vmem:[#allocation2 + $0x41] sm:$0xff] }
 0x133   : > { %v612_v47 = vpop.f32.mrf.mxu0  ;;  %v1425_v48 = vadd.f32 %v1393_v60, %v1324_v36  ;;  %v1697_v50 = vmul.f32 %v3440_v11, %v1358_v8  ;;  %v890_v51 = vmul.f32 %v3396_v25, %v1156_v5  ;;  %v991_v52 = vmul.f32 %v3401_v27, %v1257_v7  ;;  %v3542_v59 = vld [vmem:[#allocation2 + $0x42] sm:$0xff]  ;;  %v3550_v20 = vld [vmem:[#allocation2 + $0x50] sm:$0xff] }
 0x134   : > { %v1224_v43 = vadd.f32 %v1192_v22, %v1123_v21  ;;  %827 = vst.msk [vmem:[#allocation2 + $0xb1] sm:$0xff] %vm736_vm1, %v712_v30  ;;  %v715_v53 = vmax.f32 %v621_v42, 0.0  ;;  %v613_v56 = vadd.f32 %v3391_v24, %v612_v47  ;;  %v1092_v58 = vmul.f32 %v3409_v38, %v1358_v8 }
 0x135   : > { %v2655_v62 = vpop.f32.mrf.mxu0  ;;  %v1527_v63 = vadd.f32 %v1495_v37, %v1425_v48  ;;  %v1023_v0 = vadd.f32 %v991_v52, %v890_v51  ;;  %v1125_v60 = vadd.f32 %v1093_v49, %v1024_v1  ;;  %v1295_v2 = vmul.f32 %v3504_v54, %v3534_v45  ;;  %v3564_v37 = vld [vmem:[#allocation2 + $0x51] sm:$0xff] }
 0x136   : > { %v1325_v57 = vadd.f32 %v1293_v10, %v1224_v43  ;;  %830 = vst.msk [vmem:[#allocation2 + $0xe1] sm:$0xff] %vm736_vm1, %v715_v53  ;;  %v713_v5 = vmax.f32 %v613_v56, 0.0  ;;  %v634_v6 = vadd.f32 %v2655_v62, %v3391_v24  ;;  %v1395_v15 = vmul.f32 %v3509_v55, %v3463_v31  ;;  %v3560_v31 = vld [vmem:[%s4206_s4] ss:$0 sm:$0xff]  ;;  %v3573_v52 = vld [vmem:[#allocation2 + $0x52] sm:$0xff] }
 0x137   : > { %v625_v8 = vpop.f32.mrf.mxu0  ;;  %v1628_v21 = vadd.f32 %v1596_v44, %v1527_v63  ;;  %v1124_v22 = vadd.f32 %v1092_v58, %v1023_v0  ;;  %v1226_v28 = vadd.f32 %v1194_v13, %v1125_v60  ;;  %v1396_v49 = vmul.f32 %v3509_v55, %v3542_v59 }
 0x138   : > { %v1426_v7 = vadd.f32 %v1394_v29, %v1325_v57  ;;  %828 = vst.msk [vmem:[#allocation2 + $0xc1] sm:$0xff] %vm736_vm1, %v713_v5  ;;  %v718_v1 = vmax.f32 %v634_v6, 0.0  ;;  %v626_v10 = vadd.f32 %v3391_v24, %v625_v8  ;;  %v1497_v29 = vmul.f32 %v3426_v3, %v3515_v61 }
 0x139   : > { %v2656_v13 = vpop.f32.mrf.mxu0  ;;  %v1729_v30 = vadd.f32 %v1697_v50, %v1628_v21  ;;  %v1225_v42 = vadd.f32 %v1193_v9, %v1124_v22  ;;  %v1327_v43 = vadd.f32 %v1295_v2, %v1226_v28  ;;  %v1498_v44 = vmul.f32 %v3426_v3, %v3550_v20 }
 0x13a   : > { %v1528_v36 = vadd.f32 %v3484_v40, %v1426_v7  ;;  %833 = vst.msk [vmem:[#allocation2 + $0x111] sm:$0xff] %vm736_vm1, %v718_v1  ;;  %v716_v40 = vmax.f32 %v626_v10, 0.0  ;;  %v637_v47 = vadd.f32 %v2656_v13, %v3391_v24  ;;  %v1598_v51 = vmul.f32 %v3431_v4, %v3534_v45 }
 0x13b   : > { %v628_v53 = vpop.f32.mrf.mxu0  ;;  %v1768_v50 = vadd.f32 %v3560_v31, %v1729_v30  ;;  %v1326_v9 = vadd.f32 %v3523_v14, %v1225_v42  ;;  %v1428_v56 = vadd.f32 %v1396_v49, %v1327_v43  ;;  %v1599_v57 = vmul.f32 %v3431_v4, %v3564_v37 }
 0x13c   : > { %v1629_v48 = vadd.f32 %v3487_v41, %v1528_v36  ;;  %831 = vst.msk [vmem:[#allocation2 + $0xf1] sm:$0xff] %vm736_vm1, %v716_v40  ;;  %v719_v58 = vmax.f32 %v637_v47, 0.0  ;;  %v629_v62 = vadd.f32 %v3391_v24, %v628_v53  ;;  %v1699_v63 = vmul.f32 %v3440_v11, %v3542_v59 }
 0x13d   : > { %v2659_v0 = vpop.f32.mrf.mxu0  ;;  %v1800_v60 = vmax.f32 %v1768_v50, 0.0  ;;  %v1427_v2 = vadd.f32 %v1395_v15, %v1326_v9  ;;  %v1530_v5 = vadd.f32 %v1498_v44, %v1428_v56  ;;  %v1700_v14 = vmul.f32 %v3440_v11, %v3573_v52  ;;  %v1160_v44 = vld [vmem:[#allocation2 + $0x60] sm:$0xff] }
 0x13e   : > { %v1730_v41 = vadd.f32 %v3491_v46, %v1629_v48  ;;  %834 = vst.msk [vmem:[#allocation2 + $0x121] sm:$0xff] %vm736_vm1, %v719_v58  ;;  %v717_v6 = vmax.f32 %v629_v62, 0.0  ;;  %v650_v7 = vadd.f32 %v2659_v0, %v3391_v24  ;;  %v892_v46 = vmul.f32 %v3396_v25, %v3515_v61 }
 0x13f   : > { %v641_v21 = vpop.f32.mrf.mxu0  ;;  %v1529_v22 = vadd.f32 %v1497_v29, %v1427_v2  ;;  %v1631_v28 = vadd.f32 %v1599_v57, %v1530_v5  ;;  %v893_v15 = vmul.f32 %v3396_v25, %v3550_v20  ;;  %v993_v49 = vmul.f32 %v3401_v27, %v3534_v45  ;;  %v1362_v5 = vld [vmem:[#allocation2 + $0x62] sm:$0xff] }
 0x140   : > { %v1769_v8 = vadd.f32 %v3560_v31, %v1730_v41  ;;  %832 = vst.msk [vmem:[#allocation2 + $0x101] sm:$0xff] %vm736_vm1, %v717_v6  ;;  %v722_v1 = vmax.f32 %v650_v7, 0.0  ;;  %v642_v10 = vadd.f32 %v3391_v24, %v641_v21  ;;  %v994_v13 = vmul.f32 %v3401_v27, %v3564_v37  ;;  %v1261_v41 = vld [vmem:[#allocation2 + $0x61] sm:$0xff] }
 0x141   : > { %v2660_v30 = vpop.f32.mrf.mxu0  ;;  %v1630_v61 = vadd.f32 %v1598_v51, %v1529_v22  ;;  %v1732_v42 = vadd.f32 %v1700_v14, %v1631_v28  ;;  %v1025_v29 = vadd.f32 %v993_v49, %v892_v46  ;;  %v1094_v43 = vmul.f32 %v3409_v38, %v3542_v59  ;;  %v1464_v46 = vld [vmem:[#allocation2 + $0x70] sm:$0xff] }
 0x142   : > { %v1801_v36 = vmax.f32 %v1769_v8, 0.0  ;;  %837 = vst.msk [vmem:[#allocation2 + $0x171] sm:$0xff] %vm736_vm1, %v722_v1  ;;  %v720_v45 = vmax.f32 %v642_v10, 0.0  ;;  %v653_v40 = vadd.f32 %v2660_v30, %v3391_v24  ;;  %v1026_v48 = vadd.f32 %v994_v13, %v893_v15 }
 0x143   : > { %v644_v53 = vpop.f32.mrf.mxu0  ;;  %v1731_v50 = vadd.f32 %v1699_v63, %v1630_v61  ;;  %v1771_v9 = vadd.f32 %v3560_v31, %v1732_v42  ;;  %v1095_v51 = vmul.f32 %v3409_v38, %v3573_v52  ;;  %v1126_v56 = vadd.f32 %v1094_v43, %v1025_v29 }
 0x144   : > { %v1832_v47 = vpack.c.bf16 %v1801_v36, %v1800_v60  ;;  %835 = vst.msk [vmem:[#allocation2 + $0x151] sm:$0xff] %vm736_vm1, %v720_v45  ;;  %v723_v57 = vmax.f32 %v653_v40, 0.0  ;;  %v645_v59 = vadd.f32 %v3391_v24, %v644_v53  ;;  %v1195_v58 = vmul.f32 %v3481_v39, %v3550_v20  ;;  %v1565_v36 = vld [vmem:[#allocation2 + $0x71] sm:$0xff] }
 0x145   : > { %v1196_v62 = vmul.f32 %v3481_v39, %v1160_v44  ;;  %v2663_v63 = vpop.f32.mrf.mxu0  ;;  %v1770_v0 = vadd.f32 %v3560_v31, %v1731_v50  ;;  %v1803_v60 = vmax.f32 %v1771_v9, 0.0  ;;  %v1127_v2 = vadd.f32 %v1095_v51, %v1026_v48  ;;  %v1666_v40 = vld [vmem:[#allocation2 + $0x72] sm:$0xff] }
 0x146   : > { %2677 = vmatprep.mubr.msk.bf16.mxu0 %vm736_vm1, %v1832_v47  ;;  %v3615_v14 = vadd.f32 %v3474_v35, %v3471_v34  ;;  %838 = vst.msk [vmem:[#allocation2 + $0x181] sm:$0xff] %vm736_vm1, %v723_v57  ;;  %v721_v6 = vmax.f32 %v645_v59, 0.0  ;;  %v666_v7 = vadd.f32 %v2663_v63, %v3391_v24  ;;  %v1227_v8 = vadd.f32 %v1195_v58, %v1126_v56 }
 0x147   : > { %v1296_v20 = vmul.f32 %v3504_v54, %v3564_v37  ;;  %v657_v21 = vpop.f32.mrf.mxu0  ;;  %v1802_v22 = vmax.f32 %v1770_v0, 0.0  ;;  %v1228_v28 = vadd.f32 %v1196_v62, %v1127_v2  ;;  %v1297_v15 = vmul.f32 %v3504_v54, %v1261_v41  ;;  %v1162_v2 = vld [vmem:[#allocation2 + $0x80] sm:$0xff] }
 0x148   : > { %v1397_v49 = vmul.f32 %v3509_v55, %v3573_v52  ;;  %836 = vst.msk [vmem:[#allocation2 + $0x161] sm:$0xff] %vm736_vm1, %v721_v6  ;;  %v726_v34 = vmax.f32 %v666_v7, 0.0  ;;  %v658_v35 = vadd.f32 %v3391_v24, %v657_v21  ;;  %v1398_v10 = vmul.f32 %v3509_v55, %v1362_v5 }
 0x149   : > { %v1328_v1 = vadd.f32 %v1296_v20, %v1227_v8  ;;  %v1833_v13 = vpack.c.bf16 %v1803_v60, %v1802_v22  ;;  %v2664_v37 = vpop.f32.mrf.mxu0  ;;  %v1329_v30 = vadd.f32 %v1297_v15, %v1228_v28  ;;  %v1499_v61 = vmul.f32 %v3426_v3, %v1160_v44 }
 0x14a   : > { %v1500_v42 = vmul.f32 %v3426_v3, %v1464_v46  ;;  %841 = vst.msk [vmem:[#allocation2 + $0x1b1] sm:$0xff] %vm736_vm1, %v726_v34  ;;  %v724_v29 = vmax.f32 %v658_v35, 0.0  ;;  %v669_v52 = vadd.f32 %v2664_v37, %v3391_v24  ;;  %v1600_v45 = vmul.f32 %v3431_v4, %v1261_v41 }
 0x14b   : > { %v1429_v43 = vadd.f32 %v1397_v49, %v1328_v1  ;;  %2678 = vmatmul.mubr.msk.bf16.vlgmr.msra.gmra.mxu0 %vm736_vm1, %v1833_v13  ;;  %v660_v47 = vpop.f32.mrf.mxu0  ;;  %v1430_v48 = vadd.f32 %v1398_v10, %v1329_v30  ;;  %v1601_v53 = vmul.f32 %v3431_v4, %v1565_v36  ;;  %v1701_v50 = vmul.f32 %v3440_v11, %v1362_v5  ;;  %v1263_v49 = vld [vmem:[#allocation2 + $0x81] sm:$0xff] }
 0x14c   : > { %v894_v9 = vmul.f32 %v3396_v25, %v1160_v44  ;;  %839 = vst.msk [vmem:[#allocation2 + $0x191] sm:$0xff] %vm736_vm1, %v724_v29  ;;  %v727_v51 = vmax.f32 %v669_v52, 0.0  ;;  %v661_v56 = vadd.f32 %v3391_v24, %v660_v47  ;;  %v895_v59 = vmul.f32 %v3396_v25, %v1464_v46  ;;  %v1364_v30 = vld [vmem:[#allocation2 + $0x82] sm:$0xff] }
 0x14d   : > { %v1531_v57 = vadd.f32 %v1499_v61, %v1429_v43  ;;  %v1532_v58 = vadd.f32 %v1500_v42, %v1430_v48  ;;  %v1702_v62 = vmul.f32 %v3440_v11, %v1666_v40  ;;  %v2667_v63 = vpop.f32.mrf.mxu0  ;;  %v995_v0 = vmul.f32 %v3401_v27, %v1261_v41 }
 0x14e   : > { %v996_v60 = vmul.f32 %v3401_v27, %v1565_v36  ;;  %842 = vst.msk [vmem:[#allocation2 + $0x1c1] sm:$0xff] %vm736_vm1, %v727_v51  ;;  %v725_v44 = vmax.f32 %v661_v56, 0.0  ;;  %v682_v7 = vadd.f32 %v2667_v63, %v3391_v24  ;;  %v1096_v8 = vmul.f32 %v3409_v38, %v1362_v5  ;;  %v1063_v51 = vld [vmem:[#allocation2 + $0xb2] sm:$0xff] }
 0x14f   : > { %v1632_v6 = vadd.f32 %v1600_v45, %v1531_v57  ;;  %v1633_v20 = vadd.f32 %v1601_v53, %v1532_v58  ;;  %v673_v21 = vpop.f32.mrf.mxu0  ;;  %v1027_v22 = vadd.f32 %v995_v0, %v894_v9  ;;  %v1097_v15 = vmul.f32 %v3409_v38, %v1666_v40  ;;  %v861_v9 = vld [vmem:[#allocation2 + $0xb0] sm:$0xff] }
 0x150   : > { %v1028_v28 = vadd.f32 %v996_v60, %v895_v59  ;;  %840 = vst.msk [vmem:[#allocation2 + $0x1a1] sm:$0xff] %vm736_vm1, %v725_v44  ;;  %v730_v34 = vmax.f32 %v682_v7, 0.0  ;;  %v674_v35 = vadd.f32 %v3391_v24, %v673_v21  ;;  %v1198_v1 = vmul.f32 %v3481_v39, %v1162_v2  ;;  %v1164_v60 = vld [vmem:[#allocation2 + $0xc0] sm:$0xff] }
 0x151   : > { %v1733_v41 = vadd.f32 %v1701_v50, %v1632_v6  ;;  %v1734_v10 = vadd.f32 %v1702_v62, %v1633_v20  ;;  %v1128_v13 = vadd.f32 %v1096_v8, %v1027_v22  ;;  %v1197_v5 = vmul.f32 %v3481_v39, %v1464_v46  ;;  %v2668_v61 = vpop.f32.mrf.mxu0  ;;  %v962_v46 = vld [vmem:[#allocation2 + $0xb1] sm:$0xff]  ;;  %v1265_v22 = vld [vmem:[#allocation2 + $0xc1] sm:$0xff] }
 0x152   : > { %v1129_v37 = vadd.f32 %v1097_v15, %v1028_v28  ;;  %845 = vst.msk [vmem:[#allocation2 + $0x211] sm:$0xff] %vm736_vm1, %v730_v34  ;;  %v728_v29 = vmax.f32 %v674_v35, 0.0  ;;  %v1298_v52 = vmul.f32 %v3504_v54, %v1565_v36  ;;  %v1299_v43 = vmul.f32 %v3504_v54, %v1263_v49  ;;  %v1366_v35 = vld [vmem:[#allocation2 + $0xc2] sm:$0xff] }
 0x153   : > { %v1772_v42 = vadd.f32 %v3560_v31, %v1733_v41  ;;  %v1773_v45 = vadd.f32 %v3560_v31, %v1734_v10  ;;  %v1229_v47 = vadd.f32 %v1197_v5, %v1128_v13  ;;  %v1399_v53 = vmul.f32 %v3509_v55, %v1666_v40  ;;  %v676_v50 = vpop.f32.mrf.mxu0  ;;  %v1468_v5 = vld [vmem:[#allocation2 + $0xd0] sm:$0xff] }
 0x154   : > { %v1230_v48 = vadd.f32 %v1198_v1, %v1129_v37  ;;  %843 = vst.msk [vmem:[#allocation2 + $0x1f1] sm:$0xff] %vm736_vm1, %v728_v29  ;;  %v1400_v57 = vmul.f32 %v3509_v55, %v1364_v30  ;;  %v1501_v59 = vmul.f32 %v3426_v3, %v1162_v2  ;;  %v1602_v36 = vmul.f32 %v3431_v4, %v1263_v49 }
 0x155   : > { %v1804_v56 = vmax.f32 %v1772_v42, 0.0  ;;  %v1805_v58 = vmax.f32 %v1773_v45, 0.0  ;;  %v1330_v62 = vadd.f32 %v1298_v52, %v1229_v47  ;;  %v685_v0 = vadd.f32 %v2668_v61, %v3391_v24  ;;  %v2671_v28 = vpop.f32.mrf.mxu0 }
 0x156   : > { %v1331_v63 = vadd.f32 %v1299_v43, %v1230_v48  ;;  %v677_v40 = vadd.f32 %v3391_v24, %v676_v50  ;;  %v897_v44 = vmul.f32 %v3396_v25, %v861_v9  ;;  %v998_v6 = vmul.f32 %v3401_v27, %v962_v46  ;;  %v1569_v43 = vld [vmem:[#allocation2 + $0xd1] sm:$0xff] }
 0x157   : > { %v1099_v7 = vmul.f32 %v3409_v38, %v1063_v51  ;;  %v1834_v8 = vpack.c.bf16 %v1805_v58, %v1804_v56  ;;  %v1431_v20 = vadd.f32 %v1399_v53, %v1330_v62  ;;  %v731_v2 = vmax.f32 %v685_v0, 0.0  ;;  %v689_v48 = vpop.f32.mrf.mxu0  ;;  %v1670_v0 = vld [vmem:[#allocation2 + $0xd2] sm:$0xff] }
 0x158   : > { %v1432_v21 = vadd.f32 %v1400_v57, %v1331_v63  ;;  %v729_v15 = vmax.f32 %v677_v40, 0.0  ;;  %v1030_v49 = vadd.f32 %v998_v6, %v897_v44  ;;  %v1199_v41 = vmul.f32 %v3481_v39, %v861_v9 }
 0x159   : > { %v1200_v34 = vmul.f32 %v3481_v39, %v1164_v60  ;;  %2681 = vmatprep.mubr.msk.bf16.mxu0 %vm736_vm1, %v1834_v8  ;;  %v1533_v1 = vadd.f32 %v1501_v59, %v1431_v20  ;;  %v1703_v13 = vmul.f32 %v3440_v11, %v1364_v30  ;;  %846 = vst.msk [vmem:[#allocation2 + $0x221] sm:$0xff] %vm736_vm1, %v731_v2 }
 0x15a   : > { %v1534_v10 = vadd.f32 %v3443_v12, %v1432_v21  ;;  %v1300_v37 = vmul.f32 %v3504_v54, %v962_v46  ;;  %844 = vst.msk [vmem:[#allocation2 + $0x201] sm:$0xff] %vm736_vm1, %v729_v15  ;;  %v1131_v61 = vadd.f32 %v1099_v7, %v1030_v49  ;;  %v1231_v42 = vadd.f32 %v1199_v41, %v3451_v18  ;;  %v1166_v15 = vld [vmem:[#allocation2 + $0xe0] sm:$0xff] }
 0x15b   : > { %v1301_v29 = vmul.f32 %v3504_v54, %v1265_v22  ;;  %v1401_v52 = vmul.f32 %v3509_v55, %v1063_v51  ;;  %v1634_v45 = vadd.f32 %v1602_v36, %v1533_v1  ;;  %v1402_v30 = vmul.f32 %v3509_v55, %v1366_v35  ;;  %v1267_v1 = vld [vmem:[#allocation2 + $0xe1] sm:$0xff] }
 0x15c   : > { %v1635_v12 = vadd.f32 %v3446_v16, %v1534_v10  ;;  %v1503_v47 = vmul.f32 %v3426_v3, %v1164_v60  ;;  %v1232_v53 = vadd.f32 %v1200_v34, %v1131_v61  ;;  %v1332_v50 = vadd.f32 %v1300_v37, %v1231_v42  ;;  %v2672_v42 = vpop.f32.mrf.mxu0 }
 0x15d   : > { %v1504_v9 = vmul.f32 %v3426_v3, %v1468_v5  ;;  %v1604_v46 = vmul.f32 %v3431_v4, %v1265_v22  ;;  %v1735_v18 = vadd.f32 %v1703_v13, %v1634_v45  ;;  %v1605_v51 = vmul.f32 %v3431_v4, %v1569_v43 }
 0x15e   : > { %v1736_v56 = vadd.f32 %v3449_v17, %v1635_v12  ;;  %v1705_v57 = vmul.f32 %v3440_v11, %v1366_v35  ;;  %v1333_v59 = vadd.f32 %v1301_v29, %v1232_v53  ;;  %v1433_v16 = vadd.f32 %v1401_v52, %v1332_v50  ;;  %v1571_v50 = vld [vmem:[#allocation2 + $0xf1] sm:$0xff] }
 0x15f   : > { %v698_v36 = vadd.f32 %v2671_v28, %v3391_v24  ;;  %v690_v58 = vadd.f32 %v3391_v24, %v689_v48  ;;  %v1774_v62 = vadd.f32 %v3560_v31, %v1735_v18  ;;  %v898_v40 = vmul.f32 %v3396_v25, %v1164_v60 }
 0x160   : > { %v1775_v63 = vadd.f32 %v3560_v31, %v1736_v56  ;;  %v899_v44 = vmul.f32 %v3396_v25, %v1468_v5  ;;  %v1434_v17 = vadd.f32 %v1402_v30, %v1333_v59  ;;  %v1535_v6 = vadd.f32 %v1503_v47, %v1433_v16  ;;  %v1470_v30 = vld [vmem:[#allocation2 + $0xf0] sm:$0xff]  ;;  %v692_v16 = vpop.f32.mrf.mxu0 }
 0x161   : > { %v734_v7 = vmax.f32 %v698_v36, 0.0  ;;  %v732_v8 = vmax.f32 %v690_v58, 0.0  ;;  %v1806_v20 = vmax.f32 %v1774_v62, 0.0  ;;  %v999_v2 = vmul.f32 %v3401_v27, %v1265_v22  ;;  %v1368_v22 = vld [vmem:[#allocation2 + $0xe2] sm:$0xff] }
 0x162   : > { %v1807_v21 = vmax.f32 %v1775_v63, 0.0  ;;  %v1000_v28 = vmul.f32 %v3401_v27, %v1569_v43  ;;  %v1536_v49 = vadd.f32 %v1504_v9, %v1434_v17  ;;  %v1636_v41 = vadd.f32 %v1604_v46, %v1535_v6 }
 0x163   : > { %v1706_v34 = vmul.f32 %v3440_v11, %v1670_v0  ;;  %849 = vst.msk [vmem:[#allocation2 + $0x251] sm:$0xff] %vm736_vm1, %v734_v7  ;;  %847 = vst.msk [vmem:[#allocation2 + $0x231] sm:$0xff] %vm736_vm1, %v732_v8  ;;  %v1100_v60 = vmul.f32 %v3409_v38, %v1366_v35  ;;  %v1031_v13 = vadd.f32 %v999_v2, %v898_v40 }
 0x164   : > { %v1835_v10 = vpack.c.bf16 %v1807_v21, %v1806_v20  ;;  %v1032_v37 = vadd.f32 %v1000_v28, %v899_v44  ;;  %v1101_v61 = vmul.f32 %v3409_v38, %v1670_v0  ;;  %v1637_v29 = vadd.f32 %v1605_v51, %v1536_v49  ;;  %v1672_v44 = vld [vmem:[#allocation2 + $0xf2] sm:$0xff] }
 0x165   : > { %v1737_v52 = vadd.f32 %v1705_v57, %v1636_v41  ;;  %v1201_v45 = vmul.f32 %v3481_v39, %v1468_v5  ;;  %v1202_v12 = vmul.f32 %v3481_v39, %v1166_v15  ;;  %v1132_v47 = vadd.f32 %v1100_v60, %v1031_v13  ;;  %v1168_v41 = vld [vmem:[#allocation2 + $0x100] sm:$0xff] }
 0x166   : > { %2682 = vmatmul.mubr.msk.bf16.gmra.mxu0 %vm736_vm1, %v1835_v10  ;;  %v1133_v48 = vadd.f32 %v1101_v61, %v1032_v37  ;;  %v1302_v35 = vmul.f32 %v3504_v54, %v1569_v43  ;;  %v1303_v53 = vmul.f32 %v3504_v54, %v1267_v1  ;;  %v1738_v9 = vadd.f32 %v1706_v34, %v1637_v29  ;;  %v1370_v29 = vld [vmem:[#allocation2 + $0x102] sm:$0xff] }
 0x167   : > { %v1776_v46 = vadd.f32 %v3560_v31, %v1737_v52  ;;  %v1403_v18 = vmul.f32 %v3509_v55, %v1670_v0  ;;  %v1404_v56 = vmul.f32 %v3509_v55, %v1368_v22  ;;  %v1233_v5 = vadd.f32 %v1201_v45, %v1132_v47 }
 0x168   : > { %v1234_v51 = vadd.f32 %v1202_v12, %v1133_v48  ;;  %v1505_v57 = vmul.f32 %v3426_v3, %v1166_v15  ;;  %v1506_v59 = vmul.f32 %v3426_v3, %v1470_v30  ;;  %v1777_v36 = vadd.f32 %v3560_v31, %v1738_v9  ;;  %v1472_v9 = vld [vmem:[#allocation2 + $0x110] sm:$0xff] }
 0x169   : > { %v1808_v43 = vmax.f32 %v1776_v46, 0.0  ;;  %v1606_v58 = vmul.f32 %v3431_v4, %v1267_v1  ;;  %v1607_v62 = vmul.f32 %v3431_v4, %v1571_v50  ;;  %v1334_v63 = vadd.f32 %v1302_v35, %v1233_v5 }
 0x16a   : > { %v1335_v40 = vadd.f32 %v1303_v53, %v1234_v51  ;;  %v1707_v0 = vmul.f32 %v3440_v11, %v1368_v22  ;;  %v701_v17 = vadd.f32 %v2672_v42, %v3391_v24  ;;  %v1809_v6 = vmax.f32 %v1777_v36, 0.0  ;;  %v1269_v42 = vld [vmem:[#allocation2 + $0x101] sm:$0xff] }
 0x16b   : > { %v693_v7 = vadd.f32 %v3391_v24, %v692_v16  ;;  %v900_v8 = vmul.f32 %v3396_v25, %v1166_v15  ;;  %v901_v20 = vmul.f32 %v3396_v25, %v1470_v30  ;;  %v1435_v21 = vadd.f32 %v1403_v18, %v1334_v63 }
 0x16c   : > { %v1436_v2 = vadd.f32 %v1404_v56, %v1335_v40  ;;  %v735_v28 = vmax.f32 %v701_v17, 0.0  ;;  %v1001_v49 = vmul.f32 %v3401_v27, %v1267_v1  ;;  %v1836_v34 = vpack.c.bf16 %v1809_v6, %v1808_v43  ;;  %v1674_v40 = vld [vmem:[#allocation2 + $0x112] sm:$0xff] }
 0x16d   : > { %v1708_v60 = vmul.f32 %v3440_v11, %v1672_v44  ;;  %v733_v10 = vmax.f32 %v693_v7, 0.0  ;;  %v1002_v13 = vmul.f32 %v3401_v27, %v1571_v50  ;;  %v1537_v37 = vadd.f32 %v1505_v57, %v1435_v21 }
 0x16e   : > { %v1538_v61 = vadd.f32 %v1506_v59, %v1436_v2  ;;  %850 = vst.msk [vmem:[#allocation2 + $0x261] sm:$0xff] %vm736_vm1, %v735_v28  ;;  %v1033_v24 = vadd.f32 %v1001_v49, %v900_v8  ;;  %v1102_v15 = vmul.f32 %v3409_v38, %v1368_v22  ;;  %2685 = vmatprep.mubr.msk.bf16.mxu0 %vm736_vm1, %v1836_v34  ;;  %v1573_v22 = vld [vmem:[#allocation2 + $0x111] sm:$0xff]  ;;  %v1170_v28 = vld [vmem:[#allocation2 + $0x120] sm:$0xff] }
 0x16f   : > { %848 = vst.msk [vmem:[#allocation2 + $0x241] sm:$0xff] %vm736_vm1, %v733_v10  ;;  %v1034_v1 = vadd.f32 %v1002_v13, %v901_v20  ;;  %v1103_v52 = vmul.f32 %v3409_v38, %v1672_v44  ;;  %v1203_v45 = vmul.f32 %v3481_v39, %v1470_v30  ;;  %v1204_v12 = vmul.f32 %v3481_v39, %v1168_v41  ;;  %v1271_v13 = vld [vmem:[#allocation2 + $0x121] sm:$0xff] }
 0x170   : > { %v1638_v47 = vadd.f32 %v1606_v58, %v1537_v37  ;;  %v1639_v48 = vadd.f32 %v1607_v62, %v1538_v61  ;;  %v1134_v35 = vadd.f32 %v1102_v15, %v1033_v24  ;;  %v1304_v53 = vmul.f32 %v3504_v54, %v1571_v50  ;;  %v1372_v24 = vld [vmem:[#allocation2 + $0x122] sm:$0xff] }
 0x171   : > { %v1135_v46 = vadd.f32 %v1103_v52, %v1034_v1  ;;  %v1305_v18 = vmul.f32 %v3504_v54, %v1269_v42  ;;  %v1405_v56 = vmul.f32 %v3509_v55, %v1672_v44  ;;  %v1406_v5 = vmul.f32 %v3509_v55, %v1370_v29 }
 0x172   : > { %v1739_v51 = vadd.f32 %v1707_v0, %v1638_v47  ;;  %v1740_v57 = vadd.f32 %v1708_v60, %v1639_v48  ;;  %v1235_v59 = vadd.f32 %v1203_v45, %v1134_v35  ;;  %v1507_v30 = vmul.f32 %v3426_v3, %v1168_v41  ;;  %v869_v47 = vld [vmem:[#allocation2 + $0x150] sm:$0xff] }
 0x173   : > { %v1236_v16 = vadd.f32 %v1204_v12, %v1135_v46  ;;  %v1508_v36 = vmul.f32 %v3426_v3, %v1472_v9  ;;  %v1608_v43 = vmul.f32 %v3431_v4, %v1269_v42  ;;  %v1609_v50 = vmul.f32 %v3431_v4, %v1573_v22  ;;  %v970_v48 = vld [vmem:[#allocation2 + $0x151] sm:$0xff] }
 0x174   : > { %v1778_v58 = vadd.f32 %v3560_v31, %v1739_v51  ;;  %v1779_v62 = vadd.f32 %v3560_v31, %v1740_v57  ;;  %v1336_v63 = vadd.f32 %v1304_v53, %v1235_v59  ;;  %v1709_v44 = vmul.f32 %v3440_v11, %v1370_v29  ;;  %v1172_v59 = vld [vmem:[#allocation2 + $0x160] sm:$0xff] }
 0x175   : > { %v1337_v0 = vadd.f32 %v1305_v18, %v1236_v16  ;;  %v902_v17 = vmul.f32 %v3396_v25, %v1168_v41  ;;  %v903_v6 = vmul.f32 %v3396_v25, %v1472_v9  ;;  %v1003_v7 = vmul.f32 %v3401_v27, %v1269_v42  ;;  %v3755_v16 = vld [vmem:[%s4205_s3] ss:$0 sm:$0xff] }
 0x176   : > { %v1810_v8 = vmax.f32 %v1778_v58, 0.0  ;;  %v1811_v20 = vmax.f32 %v1779_v62, 0.0  ;;  %v1437_v21 = vadd.f32 %v1405_v56, %v1336_v63  ;;  %v1004_v2 = vmul.f32 %v3401_v27, %v1573_v22  ;;  %v1071_v56 = vld [vmem:[#allocation2 + $0x152] sm:$0xff] }
 0x177   : > { %v1438_v49 = vadd.f32 %v1406_v5, %v1337_v0  ;;  %v1710_v34 = vmul.f32 %v3440_v11, %v1674_v40  ;;  %v1035_v60 = vadd.f32 %v1003_v7, %v902_v17  ;;  %v1104_v10 = vmul.f32 %v3409_v38, %v1370_v29  ;;  %v1273_v7 = vld [vmem:[#allocation2 + $0x161] sm:$0xff] }
 0x178   : > { %v1837_v37 = vpack.c.bf16 %v1811_v20, %v1810_v8  ;;  %v1539_v61 = vadd.f32 %v1507_v30, %v1437_v21  ;;  %v1036_v41 = vadd.f32 %v1004_v2, %v903_v6  ;;  %v1105_v25 = vmul.f32 %v3409_v38, %v1674_v40 }
 0x179   : > { %v1540_v15 = vadd.f32 %v1508_v36, %v1438_v49  ;;  %v1136_v42 = vadd.f32 %v1104_v10, %v1035_v60  ;;  %v1205_v1 = vmul.f32 %v3481_v39, %v1472_v9  ;;  %v1206_v27 = vmul.f32 %v3481_v39, %v1170_v28  ;;  %v1476_v10 = vld [vmem:[#allocation2 + $0x170] sm:$0xff] }
 0x17a   : > { %2686 = vmatmul.mubr.msk.bf16.gmra.mxu0 %vm736_vm1, %v1837_v37  ;;  %v1640_v52 = vadd.f32 %v1608_v43, %v1539_v61  ;;  %v1137_v45 = vadd.f32 %v1105_v25, %v1036_v41  ;;  %v1306_v12 = vmul.f32 %v3504_v54, %v1573_v22  ;;  %v1307_v29 = vmul.f32 %v3504_v54, %v1271_v13  ;;  %v3761_v43 = vld [vmem:[%s4205_s3 + $0x1] ss:$0 sm:$0xff]  ;;  %v1577_v25 = vld [vmem:[#allocation2 + $0x171] sm:$0xff] }
 0x17b   : > { %v1641_v35 = vadd.f32 %v1609_v50, %v1540_v15  ;;  %v1237_v53 = vadd.f32 %v1205_v1, %v1136_v42  ;;  %v1407_v46 = vmul.f32 %v3509_v55, %v1674_v40  ;;  %v1408_v18 = vmul.f32 %v3509_v55, %v1372_v24 }
 0x17c   : > { %v1741_v9 = vadd.f32 %v1709_v44, %v1640_v52  ;;  %v1238_v5 = vadd.f32 %v1206_v27, %v1137_v45  ;;  %v1509_v51 = vmul.f32 %v3426_v3, %v1170_v28  ;;  %v1610_v57 = vmul.f32 %v3431_v4, %v1271_v13  ;;  %v1374_v28 = vld [vmem:[#allocation2 + $0x162] sm:$0xff] }
 0x17d   : > { %v1742_v30 = vadd.f32 %v1710_v34, %v1641_v35  ;;  %v1338_v22 = vadd.f32 %v1306_v12, %v1237_v53  ;;  %v905_v36 = vmul.f32 %v3755_v16, %v869_v47  ;;  %v1006_v50 = vmul.f32 %v3761_v43, %v970_v48 }
 0x17e   : > { %v1780_v58 = vadd.f32 %v3560_v31, %v1741_v9  ;;  %v1339_v62 = vadd.f32 %v1307_v29, %v1238_v5  ;;  %v1107_v63 = vmul.f32 %v3409_v38, %v1071_v56  ;;  %v1207_v40 = vmul.f32 %v3481_v39, %v869_v47 }
 0x17f   : > { %v1781_v44 = vadd.f32 %v3560_v31, %v1742_v30  ;;  %v1439_v0 = vadd.f32 %v1407_v46, %v1338_v22  ;;  %v1038_v17 = vadd.f32 %v1006_v50, %v905_v36  ;;  %v1208_v6 = vmul.f32 %v3481_v39, %v1172_v59  ;;  %v3799_v36 = vld [vmem:[%s4205_s3 + $0x2] ss:$0 sm:$0xff] }
 0x180   : > { %v1440_v8 = vadd.f32 %v1408_v18, %v1339_v62  ;;  %v1711_v20 = vmul.f32 %v3440_v11, %v1372_v24  ;;  %v1239_v21 = vadd.f32 %v1207_v40, %v3461_v26  ;;  %v1308_v2 = vmul.f32 %v3504_v54, %v970_v48  ;;  %v1678_v48 = vld [vmem:[#allocation2 + $0x172] sm:$0xff] }
 0x181   : > { %v1812_v49 = vmax.f32 %v1780_v58, 0.0  ;;  %v1813_v34 = vmax.f32 %v1781_v44, 0.0  ;;  %v1541_v38 = vadd.f32 %v1509_v51, %v1439_v0  ;;  %v1139_v60 = vadd.f32 %v1107_v63, %v1038_v17  ;;  %v1275_v44 = vld [vmem:[#allocation2 + $0x181] sm:$0xff] }
 0x182   : > { %v1542_v13 = vadd.f32 %v3454_v19, %v1440_v8  ;;  %v1309_v37 = vmul.f32 %v3504_v54, %v1273_v7  ;;  %v1340_v61 = vadd.f32 %v1308_v2, %v1239_v21  ;;  %v1409_v41 = vmul.f32 %v3509_v55, %v1071_v56  ;;  %v1376_v8 = vld [vmem:[#allocation2 + $0x182] sm:$0xff] }
 0x183   : > { %v1838_v15 = vpack.c.bf16 %v1813_v34, %v1812_v49  ;;  %v1642_v24 = vadd.f32 %v1610_v57, %v1541_v38  ;;  %v1240_v42 = vadd.f32 %v1208_v6, %v1139_v60  ;;  %v1410_v26 = vmul.f32 %v3509_v55, %v1374_v28  ;;  %v1174_v57 = vld [vmem:[#allocation2 + $0x180] sm:$0xff]  ;;  %v2838_v34 = vld [vmem:[%s4209_s7 + $0x10] sm:$0xff]  }
 0x184   : > { %v1643_v1 = vadd.f32 %v3459_v23, %v1542_v13  ;;  %v1441_v27 = vadd.f32 %v1409_v41, %v1340_v61  ;;  %v1511_v52 = vmul.f32 %v3426_v3, %v1172_v59  ;;  %v1512_v45 = vmul.f32 %v3426_v3, %v1476_v10 }
 0x185   : > { %2689 = vmatprep.mubr.msk.bf16.mxu1 %vm736_vm1, %v1838_v15  ;;  %v1743_v19 = vadd.f32 %v1711_v20, %v1642_v24  ;;  %v1341_v12 = vadd.f32 %v1309_v37, %v1240_v42  ;;  %v1612_v29 = vmul.f32 %v3431_v4, %v1273_v7  ;;  %v1613_v47 = vmul.f32 %v3431_v4, %v1577_v25  ;;  %v3792_v4 = vld [vmem:[%s4205_s3 + $0x8] ss:$0 sm:$0xff]  ;;  %v1579_v37 = vld [vmem:[#allocation2 + $0x191] sm:$0xff] }
 0x186   : > { %v1744_v35 = vadd.f32 %v3466_v32, %v1643_v1  ;;  %v1543_v53 = vadd.f32 %v1511_v52, %v1441_v27  ;;  %v1713_v46 = vmul.f32 %v3440_v11, %v1374_v28  ;;  %v906_v23 = vmul.f32 %v3755_v16, %v1172_v59  ;;  %v1680_v27 = vld [vmem:[#allocation2 + $0x192] sm:$0xff] }
 0x187   : > { %v1782_v18 = vadd.f32 %v3560_v31, %v1743_v19  ;;  %v1442_v56 = vadd.f32 %v1410_v26, %v1341_v12  ;;  %v907_v3 = vmul.f32 %v3755_v16, %v1476_v10  ;;  %v1007_v9 = vmul.f32 %v3761_v43, %v1273_v7 }
 0x188   : > { %v1783_v5 = vadd.f32 %v3560_v31, %v1744_v35  ;;  %v1644_v51 = vadd.f32 %v1612_v29, %v1543_v53  ;;  %v1714_v32 = vmul.f32 %v3792_v4, %v1678_v48  ;;  %v1008_v11 = vmul.f32 %v3761_v43, %v1577_v25  ;;  %v2839_v29 = vld [vmem:[%s4209_s7 + $0x8] sm:$0xff]  }
 0x189   : > { %v1814_v59 = vmax.f32 %v1782_v18, 0.0  ;;  %v1544_v30 = vadd.f32 %v1512_v45, %v1442_v56  ;;  %v1039_v22 = vadd.f32 %v1007_v9, %v906_v23  ;;  %v1108_v50 = vmul.f32 %v3799_v36, %v1374_v28  ;;  %v1478_v28 = vld [vmem:[#allocation2 + $0x190] sm:$0xff]  ;;  %v1277_v9 = vld [vmem:[#allocation2 + $0x1a1] sm:$0xff] }
 0x18a   : > { %v1815_v58 = vmax.f32 %v1783_v5, 0.0  ;;  %v1745_v62 = vadd.f32 %v1713_v46, %v1644_v51  ;;  %v1040_v63 = vadd.f32 %v1008_v11, %v907_v3  ;;  %v1109_v40 = vmul.f32 %v3799_v36, %v1678_v48  ;;  %v1176_v46 = vld [vmem:[#allocation2 + $0x1a0] sm:$0xff] }
 0x18b   : > { %v1645_v0 = vadd.f32 %v1613_v47, %v1544_v30  ;;  %v1140_v17 = vadd.f32 %v1108_v50, %v1039_v22  ;;  %v1209_v6 = vmul.f32 %v3481_v39, %v1476_v10  ;;  %v1210_v7 = vmul.f32 %v3481_v39, %v1174_v57  ;;  %v3845_v11 = vld [vmem:[%s4205_s3 + $0x3] ss:$0 sm:$0xff] }
 0x18c   : > { %v1839_v20 = vpack.c.bf16 %v1815_v58, %v1814_v59  ;;  %v1784_v21 = vadd.f32 %v3560_v31, %v1745_v62  ;;  %v1141_v2 = vadd.f32 %v1109_v40, %v1040_v63  ;;  %v1310_v49 = vmul.f32 %v3504_v54, %v1577_v25  ;;  %v3817_v25 = vld [vmem:[%s4205_s3 + $0x6] ss:$0 sm:$0xff]  ;;  %v1480_v62 = vld [vmem:[#allocation2 + $0x1b0] sm:$0xff] }
 0x18d   : > { %v1746_v38 = vadd.f32 %v1714_v32, %v1645_v0  ;;  %v1241_v60 = vadd.f32 %v1209_v6, %v1140_v17  ;;  %v1311_v13 = vmul.f32 %v3504_v54, %v1275_v44  ;;  %v1411_v10 = vmul.f32 %v3509_v55, %v1678_v48  ;;  %v2846_v54 = vld [vmem:[%s4209_s7 + $0x18] sm:$0xff]   ;;  %v1378_v59 = vld [vmem:[#allocation2 + $0x1a2] sm:$0xff] }
 0x18e   : > { %2690 = vmatmul.mubr.msk.bf16.vlgmr.msra.gmra.mxu1 %vm736_vm1, %v1839_v20  ;;  %v1816_v39 = vmax.f32 %v1784_v21, 0.0  ;;  %v1242_v61 = vadd.f32 %v1210_v7, %v1141_v2  ;;  %v1412_v41 = vmul.f32 %v3509_v55, %v1376_v8  ;;  %v1513_v15 = vmul.f32 %v3817_v25, %v1174_v57  ;;  %v3828_v55 = vld [vmem:[%s4205_s3 + $0x7] ss:$0 sm:$0xff]  ;;  %v3857_v0 = vld [vmem:[%s4205_s3 + $0x4] ss:$0 sm:$0xff]  ;;  %v1581_v7 = vld [vmem:[#allocation2 + $0x1b1] sm:$0xff] }
 0x18f   : > { %2710 = vmatpush3.bf16.msra.mxu1 %v2846_v54  ;;  %v1785_v24 = vadd.f32 %v3560_v31, %v1746_v38  ;;  %v1342_v42 = vadd.f32 %v1310_v49, %v1241_v60  ;;  %v1514_v26 = vmul.f32 %v3817_v25, %v1478_v28  ;;  %v1614_v1 = vmul.f32 %v3828_v55, %v1275_v44  ;;  %v2840_v63 = vld [vmem:[%s4209_s7] sm:$0xff]  }
 0x190   : > { %v1343_v52 = vadd.f32 %v1311_v13, %v1242_v61  ;;  %v1615_v45 = vmul.f32 %v3828_v55, %v1579_v37  ;;  %v1715_v19 = vmul.f32 %v3792_v4, %v1376_v8  ;;  %2711 = vmatprep.subr.bf16.mxu1 %v2838_v34  ;;  %v908_v12 = vmul.f32 %v3755_v16, %v1174_v57  ;;  %v3864_v21 = vld [vmem:[%s4205_s3 + $0x5] ss:$0 sm:$0xff]  ;;  %v1682_v61 = vld [vmem:[#allocation2 + $0x1b2] sm:$0xff] }
 0x191   : > { %v1817_v47 = vmax.f32 %v1785_v24, 0.0  ;;  %v1443_v48 = vadd.f32 %v1411_v10, %v1342_v42  ;;  %v909_v35 = vmul.f32 %v3755_v16, %v1478_v28  ;;  %v1009_v53 = vmul.f32 %v3761_v43, %v1275_v44 }
 0x192   : > { %v1444_v23 = vadd.f32 %v1412_v41, %v1343_v52  ;;  %v1716_v18 = vmul.f32 %v3792_v4, %v1680_v27  ;;  %v1010_v56 = vmul.f32 %v3761_v43, %v1579_v37  ;;  %v1110_v3 = vmul.f32 %v3799_v36, %v1376_v8  ;;  %v1178_v52 = vld [vmem:[#allocation2 + $0x1c0] sm:$0xff] }
 0x193   : > { %v1840_v5 = vpack.c.bf16 %v1817_v47, %v1816_v39  ;;  %v1545_v51 = vadd.f32 %v1513_v15, %v1443_v48  ;;  %2712 = vmatpush3.bf16.msra.mxu1 %v2838_v34  ;;  %v1041_v32 = vadd.f32 %v1009_v53, %v908_v12  ;;  %v1211_v57 = vmul.f32 %v3845_v11, %v1478_v28 }
 0x194   : > { %v1546_v30 = vadd.f32 %v1514_v26, %v1444_v23  ;;  %v1042_v22 = vadd.f32 %v1010_v56, %v909_v35  ;;  %v1111_v50 = vmul.f32 %v3799_v36, %v1680_v27  ;;  %v1212_v58 = vmul.f32 %v3845_v11, %v1176_v46  ;;  %2713 = vmatprep.subr.bf16.mxu1 %v2839_v29 }
 0x195   : > { %2693 = vmatprep.mubr.msk.bf16.mxu1 %vm736_vm1, %v1840_v5  ;;  %v1646_v40 = vadd.f32 %v1614_v1, %v1545_v51  ;;  %v1142_v44 = vadd.f32 %v1110_v3, %v1041_v32  ;;  %v1312_v17 = vmul.f32 %v3857_v0, %v1579_v37  ;;  %v1313_v6 = vmul.f32 %v3857_v0, %v1277_v9  ;;  %v1380_v3 = vld [vmem:[#allocation2 + $0x1c2] sm:$0xff] }
 0x196   : > { %v1647_v8 = vadd.f32 %v1615_v45, %v1546_v30  ;;  %v1143_v20 = vadd.f32 %v1111_v50, %v1042_v22  ;;  %v1413_v2 = vmul.f32 %v3864_v21, %v1680_v27  ;;  %v1414_v49 = vmul.f32 %v3864_v21, %v1378_v59 }
 0x197   : > { %v1747_v28 = vadd.f32 %v1715_v19, %v1646_v40  ;;  %v1243_v34 = vadd.f32 %v1211_v57, %v1142_v44  ;;  %v1515_v38 = vmul.f32 %v3817_v25, %v1176_v46  ;;  %v1516_v60 = vmul.f32 %v3817_v25, %v1480_v62  ;;  %2714 = vmatpush3.bf16.msra.mxu1 %v2839_v29 }
 0x198   : > { %v1748_v13 = vadd.f32 %v1716_v18, %v1647_v8  ;;  %v1244_v10 = vadd.f32 %v1212_v58, %v1143_v20  ;;  %v1616_v37 = vmul.f32 %v3828_v55, %v1277_v9  ;;  %v1617_v39 = vmul.f32 %v3828_v55, %v1581_v7  ;;  %2715 = vmatprep.subr.bf16.mxu1 %v2840_v63 }
 0x199   : > { %v1786_v41 = vadd.f32 %v3560_v31, %v1747_v28  ;;  %v1344_v15 = vadd.f32 %v1312_v17, %v1243_v34  ;;  %v1717_v54 = vmul.f32 %v3792_v4, %v1378_v59  ;;  %v910_v24 = vmul.f32 %v3755_v16, %v1176_v46  ;;  %v1279_v46 = vld [vmem:[#allocation2 + $0x1c1] sm:$0xff]  ;;  %v877_v17 = vld [vmem:[#allocation2 + $0x1f0] sm:$0xff] }
 0x19a   : > { %v1787_v42 = vadd.f32 %v3560_v31, %v1748_v13  ;;  %v1345_v26 = vadd.f32 %v1313_v6, %v1244_v10  ;;  %v911_v1 = vmul.f32 %v3755_v16, %v1480_v62  ;;  %v1011_v27 = vmul.f32 %v3761_v43, %v1277_v9  ;;  %v978_v6 = vld [vmem:[#allocation2 + $0x1f1] sm:$0xff]  ;;  %v3896_v13 = vld [vmem:[%s4206_s4] ss:$0 sm:$0xff] }
 0x19b   : > { %v1818_v45 = vmax.f32 %v1786_v41, 0.0  ;;  %v1445_v19 = vadd.f32 %v1413_v2, %v1344_v15  ;;  %v1718_v12 = vmul.f32 %v3792_v4, %v1682_v61  ;;  %v1012_v29 = vmul.f32 %v3761_v43, %v1581_v7  ;;  %2716 = vmatpush3.bf16.msra.mxu1 %v2840_v63 }
 0x19c   : > { %v1819_v47 = vmax.f32 %v1787_v42, 0.0  ;;  %v1446_v48 = vadd.f32 %v1414_v49, %v1345_v26  ;;  %v1043_v35 = vadd.f32 %v1011_v27, %v910_v24  ;;  %v1112_v53 = vmul.f32 %v3799_v36, %v1378_v59  ;;  %v1583_v59 = vld [vmem:[#allocation2 + $0x1d1] sm:$0xff]  ;;  %v1281_v26 = vld [vmem:[#allocation2 + $0x201] sm:$0xff] }
 0x19d   : > { %v1547_v31 = vadd.f32 %v1515_v38, %v1445_v19  ;;  %v1044_v23 = vadd.f32 %v1012_v29, %v911_v1  ;;  %v1113_v18 = vmul.f32 %v3799_v36, %v1682_v61  ;;  %v1214_v56 = vmul.f32 %v3845_v11, %v1178_v52 }
 0x19e   : > { %v1841_v9 = vpack.c.bf16 %v1819_v47, %v1818_v45  ;;  %v1548_v5 = vadd.f32 %v1516_v60, %v1446_v48  ;;  %v1144_v51 = vadd.f32 %v1112_v53, %v1043_v35  ;;  %v1213_v32 = vmul.f32 %v3845_v11, %v1480_v62  ;;  %v1180_v60 = vld [vmem:[#allocation2 + $0x200] sm:$0xff] }
 0x19f   : > { %v1648_v57 = vadd.f32 %v1616_v37, %v1547_v31  ;;  %v1145_v30 = vadd.f32 %v1113_v18, %v1044_v23  ;;  %v1314_v22 = vmul.f32 %v3857_v0, %v1581_v7  ;;  %v1315_v50 = vmul.f32 %v3857_v0, %v1279_v46  ;;  %v1079_v7 = vld [vmem:[#allocation2 + $0x1f2] sm:$0xff]  ;;  %v1382_v48 = vld [vmem:[#allocation2 + $0x202] sm:$0xff] }
 0x1a0   : > { %2694 = vmatmul.mubr.msk.bf16.gmra.mxu1 %vm736_vm1, %v1841_v9  ;;  %v1649_v58 = vadd.f32 %v1617_v39, %v1548_v5  ;;  %v1245_v63 = vadd.f32 %v1213_v32, %v1144_v51  ;;  %v1415_v40 = vmul.f32 %v3864_v21, %v1682_v61  ;;  %v1416_v44 = vmul.f32 %v3864_v21, %v1380_v3  ;;  %v1484_v23 = vld [vmem:[#allocation2 + $0x210] sm:$0xff] }
 0x1a1   : > { %v1749_v8 = vadd.f32 %v1717_v54, %v1648_v57  ;;  %v1246_v20 = vadd.f32 %v1214_v56, %v1145_v30  ;;  %v1517_v62 = vmul.f32 %v3817_v25, %v1178_v52  ;;  %v1618_v2 = vmul.f32 %v3828_v55, %v1279_v46  ;;  %v1684_v54 = vld [vmem:[#allocation2 + $0x1d2] sm:$0xff] }
 0x1a2   : > { %v1750_v49 = vadd.f32 %v1718_v12, %v1649_v58  ;;  %v1346_v28 = vadd.f32 %v1314_v22, %v1245_v63  ;;  %v1619_v34 = vmul.f32 %v3828_v55, %v1583_v59  ;;  %v1719_v38 = vmul.f32 %v3792_v4, %v1380_v3  ;;  %v1585_v5 = vld [vmem:[#allocation2 + $0x211] sm:$0xff] }
 0x1a3   : > { %v1788_v10 = vadd.f32 %v3896_v13, %v1749_v8  ;;  %v1347_v37 = vadd.f32 %v1315_v50, %v1246_v20  ;;  %v913_v39 = vmul.f32 %v3755_v16, %v877_v17  ;;  %v1014_v61 = vmul.f32 %v3761_v43, %v978_v6 }
 0x1a4   : > { %v1789_v41 = vadd.f32 %v3896_v13, %v1750_v49  ;;  %v1447_v15 = vadd.f32 %v1415_v40, %v1346_v28  ;;  %v1115_v24 = vmul.f32 %v3799_v36, %v1079_v7  ;;  %v1215_v42 = vmul.f32 %v3845_v11, %v877_v17  ;;  %v1686_v40 = vld [vmem:[#allocation2 + $0x212] sm:$0xff]  ;;  %v1182_v28 = vld [vmem:[#allocation2 + $0x220] sm:$0xff] }
 0x1a5   : > { %v1820_v1 = vmax.f32 %v1788_v10, 0.0  ;;  %v1448_v27 = vadd.f32 %v1416_v44, %v1347_v37  ;;  %v1046_v52 = vadd.f32 %v1014_v61, %v913_v39  ;;  %v1216_v45 = vmul.f32 %v3845_v11, %v1180_v60 }
 0x1a6   : > { %v1821_v19 = vmax.f32 %v1789_v41, 0.0  ;;  %v1549_v12 = vadd.f32 %v1517_v62, %v1447_v15  ;;  %v1247_v29 = vadd.f32 %v1215_v42, %v3615_v14  ;;  %v1316_v47 = vmul.f32 %v3857_v0, %v978_v6  ;;  %v1283_v15 = vld [vmem:[#allocation2 + $0x221] sm:$0xff] }
 0x1a7   : > { %v1550_v35 = vadd.f32 %v3469_v33, %v1448_v27  ;;  %v1720_v53 = vmul.f32 %v3792_v4, %v1684_v54  ;;  %v1147_v46 = vadd.f32 %v1115_v24, %v1046_v52  ;;  %v1317_v31 = vmul.f32 %v3857_v0, %v1281_v26 }
 0x1a8   : > { %v1842_v18 = vpack.c.bf16 %v1821_v19, %v1820_v1  ;;  %v1650_v56 = vadd.f32 %v1618_v2, %v1549_v12  ;;  %v1348_v3 = vadd.f32 %v1316_v47, %v1247_v29  ;;  %v1417_v9 = vmul.f32 %v3864_v21, %v1079_v7  ;;  %v1384_v19 = vld [vmem:[#allocation2 + $0x222] sm:$0xff]  ;;  %v1486_v12 = vld [vmem:[#allocation2 + $0x230] sm:$0xff] }
 0x1a9   : > { %v1651_v51 = vadd.f32 %v1619_v34, %v1550_v35  ;;  %v1248_v32 = vadd.f32 %v1216_v45, %v1147_v46  ;;  %v1418_v14 = vmul.f32 %v3864_v21, %v1382_v48  ;;  %v1519_v57 = vmul.f32 %v3817_v25, %v1180_v60 }
 0x1aa   : > { %2697 = vmatprep.mubr.msk.bf16.mxu1 %vm736_vm1, %v1842_v18  ;;  %v1751_v33 = vadd.f32 %v1719_v38, %v1650_v56  ;;  %v1449_v30 = vadd.f32 %v1417_v9, %v1348_v3  ;;  %v1520_v22 = vmul.f32 %v3817_v25, %v1484_v23  ;;  %v1620_v50 = vmul.f32 %v3828_v55, %v1281_v26 }
 0x1ab   : > { %v1752_v59 = vadd.f32 %v1720_v53, %v1651_v51  ;;  %v1349_v58 = vadd.f32 %v1317_v31, %v1248_v32  ;;  %v1621_v63 = vmul.f32 %v3828_v55, %v1585_v5  ;;  %v1721_v44 = vmul.f32 %v3792_v4, %v1382_v48 }
 0x1ac   : > { %v1790_v17 = vadd.f32 %v3896_v13, %v1751_v33  ;;  %v1551_v6 = vadd.f32 %v1519_v57, %v1449_v30  ;;  %v914_v8 = vmul.f32 %v3755_v16, %v1180_v60  ;;  %v915_v20 = vmul.f32 %v3755_v16, %v1484_v23  ;;  %v1688_v57 = vld [vmem:[#allocation2 + $0x232] sm:$0xff] }
 0x1ad   : > { %v1791_v62 = vadd.f32 %v3896_v13, %v1752_v59  ;;  %v1450_v2 = vadd.f32 %v1418_v14, %v1349_v58  ;;  %v1015_v7 = vmul.f32 %v3761_v43, %v1281_v26  ;;  %v1016_v49 = vmul.f32 %v3761_v43, %v1585_v5 }
 0x1ae   : > { %v1822_v34 = vmax.f32 %v1790_v17, 0.0  ;;  %v1652_v38 = vadd.f32 %v1620_v50, %v1551_v6  ;;  %v1116_v10 = vmul.f32 %v3799_v36, %v1382_v48  ;;  %v1117_v37 = vmul.f32 %v3799_v36, %v1686_v40 }
 0x1af   : > { %v1823_v39 = vmax.f32 %v1791_v62, 0.0  ;;  %v1552_v61 = vadd.f32 %v1520_v22, %v1450_v2  ;;  %v1047_v41 = vadd.f32 %v1015_v7, %v914_v8  ;;  %v1048_v60 = vadd.f32 %v1016_v49, %v915_v20 }
 0x1b0   : > { %v1722_v54 = vmul.f32 %v3792_v4, %v1686_v40  ;;  %v1753_v24 = vadd.f32 %v1721_v44, %v1652_v38  ;;  %v1217_v42 = vmul.f32 %v3845_v11, %v1484_v23  ;;  %v1218_v26 = vmul.f32 %v3845_v11, %v1182_v28  ;;  %v1587_v23 = vld [vmem:[#allocation2 + $0x231] sm:$0xff]  ;;  %v1184_v44 = vld [vmem:[#allocation2 + $0x240] sm:$0xff] }
 0x1b1   : > { %v1843_v1 = vpack.c.bf16 %v1823_v39, %v1822_v34  ;;  %v1653_v27 = vadd.f32 %v1621_v63, %v1552_v61  ;;  %v1148_v52 = vadd.f32 %v1116_v10, %v1047_v41  ;;  %v1149_v45 = vadd.f32 %v1117_v37, %v1048_v60  ;;  %v1386_v34 = vld [vmem:[#allocation2 + $0x242] sm:$0xff] }
 0x1b2   : > { %v1792_v29 = vadd.f32 %v3896_v13, %v1753_v24  ;;  %v1318_v47 = vmul.f32 %v3857_v0, %v1585_v5  ;;  %v1319_v48 = vmul.f32 %v3857_v0, %v1283_v15  ;;  %v1419_v31 = vmul.f32 %v3864_v21, %v1686_v40  ;;  %v1589_v24 = vld [vmem:[#allocation2 + $0x251] sm:$0xff] }
 0x1b3   : > { %2698 = vmatmul.mubr.msk.bf16.gmra.mxu1 %vm736_vm1, %v1843_v1  ;;  %v1754_v35 = vadd.f32 %v1722_v54, %v1653_v27  ;;  %v1249_v53 = vadd.f32 %v1217_v42, %v1148_v52  ;;  %v1250_v46 = vadd.f32 %v1218_v26, %v1149_v45  ;;  %v1420_v56 = vmul.f32 %v3864_v21, %v1384_v19  ;;  %v1488_v54 = vld [vmem:[#allocation2 + $0x250] sm:$0xff] }
 0x1b4   : > { %v1824_v18 = vmax.f32 %v1792_v29, 0.0  ;;  %v1521_v3 = vmul.f32 %v3817_v25, %v1182_v28  ;;  %v1522_v9 = vmul.f32 %v3817_v25, %v1486_v12  ;;  %v1622_v14 = vmul.f32 %v3828_v55, %v1283_v15 }
 0x1b5   : > { %v1793_v51 = vadd.f32 %v3896_v13, %v1754_v35  ;;  %v1350_v5 = vadd.f32 %v1318_v47, %v1249_v53  ;;  %v1351_v32 = vadd.f32 %v1319_v48, %v1250_v46  ;;  %v1623_v33 = vmul.f32 %v3828_v55, %v1587_v23 }
 0x1b6   : > { %v916_v30 = vmul.f32 %v3755_v16, %v1182_v28  ;;  %v917_v22 = vmul.f32 %v3755_v16, %v1486_v12  ;;  %v1017_v50 = vmul.f32 %v3761_v43, %v1283_v15  ;;  %v1018_v40 = vmul.f32 %v3761_v43, %v1587_v23  ;;  %v1285_v28 = vld [vmem:[#allocation2 + $0x241] sm:$0xff] }
 0x1b7   : > { %v1825_v59 = vmax.f32 %v1793_v51, 0.0  ;;  %v1451_v58 = vadd.f32 %v1419_v31, %v1350_v5  ;;  %v1452_v63 = vadd.f32 %v1420_v56, %v1351_v32  ;;  %v1118_v6 = vmul.f32 %v3799_v36, %v1384_v19  ;;  %v1186_v5 = vld [vmem:[#allocation2 + $0x260] sm:$0xff] }
 0x1b8   : > { %v1049_v17 = vadd.f32 %v1017_v50, %v916_v30  ;;  %v1119_v8 = vmul.f32 %v3799_v36, %v1688_v57  ;;  %v1219_v20 = vmul.f32 %v3845_v11, %v1486_v12  ;;  %v1050_v49 = vadd.f32 %v1018_v40, %v917_v22 }
 0x1b9   : > { %v1844_v62 = vpack.c.bf16 %v1825_v59, %v1824_v18  ;;  %v1553_v2 = vadd.f32 %v1521_v3, %v1451_v58  ;;  %v1554_v7 = vadd.f32 %v1522_v9, %v1452_v63  ;;  %v1723_v38 = vmul.f32 %v3792_v4, %v1384_v19 }
 0x1ba   : > { %v1724_v10 = vmul.f32 %v3792_v4, %v1688_v57  ;;  %v1150_v37 = vadd.f32 %v1118_v6, %v1049_v17  ;;  %v1220_v39 = vmul.f32 %v3845_v11, %v1184_v44  ;;  %v1151_v60 = vadd.f32 %v1119_v8, %v1050_v49 }
 0x1bb   : > { %2701 = vmatprep.mubr.msk.bf16.mxu1 %vm736_vm1, %v1844_v62  ;;  %v1654_v61 = vadd.f32 %v1622_v14, %v1553_v2  ;;  %v1655_v41 = vadd.f32 %v1623_v33, %v1554_v7  ;;  %v1320_v15 = vmul.f32 %v3857_v0, %v1587_v23  ;;  %v1321_v26 = vmul.f32 %v3857_v0, %v1285_v28  ;;  %v1690_v23 = vld [vmem:[#allocation2 + $0x252] sm:$0xff] }
 0x1bc   : > { %v1251_v42 = vadd.f32 %v1219_v20, %v1150_v37  ;;  %v1421_v1 = vmul.f32 %v3864_v21, %v1688_v57  ;;  %v1422_v27 = vmul.f32 %v3864_v21, %v1386_v34  ;;  %v1252_v19 = vadd.f32 %v1220_v39, %v1151_v60  ;;  %v1388_v20 = vld [vmem:[#allocation2 + $0x262] sm:$0xff]  ;;  %v1490_v7 = vld [vmem:[#allocation2 + $0x270] sm:$0xff] }
 0x1bd   : > { %v1755_v52 = vadd.f32 %v1723_v38, %v1654_v61  ;;  %v1756_v45 = vadd.f32 %v1724_v10, %v1655_v41  ;;  %v1523_v12 = vmul.f32 %v3817_v25, %v1184_v44  ;;  %v1524_v47 = vmul.f32 %v3817_v25, %v1488_v54 }
 0x1be   : > { %v1352_v29 = vadd.f32 %v1320_v15, %v1251_v42  ;;  %v1624_v48 = vmul.f32 %v3828_v55, %v1285_v28  ;;  %v1625_v35 = vmul.f32 %v3828_v55, %v1589_v24  ;;  %v1353_v31 = vadd.f32 %v1321_v26, %v1252_v19 }
 0x1bf   : > { %v1794_v53 = vadd.f32 %v3896_v13, %v1755_v52  ;;  %v1795_v46 = vadd.f32 %v3896_v13, %v1756_v45  ;;  %v918_v18 = vmul.f32 %v3755_v16, %v1184_v44  ;;  %v919_v3 = vmul.f32 %v3755_v16, %v1488_v54  ;;  %v1287_v44 = vld [vmem:[#allocation2 + $0x261] sm:$0xff] }
 0x1c0   : > { %v1453_v56 = vadd.f32 %v1421_v1, %v1352_v29  ;;  %v1019_v9 = vmul.f32 %v3761_v43, %v1285_v28  ;;  %v1020_v51 = vmul.f32 %v3761_v43, %v1589_v24  ;;  %v1454_v57 = vadd.f32 %v1422_v27, %v1353_v31 }
 0x1c1   : > { %v1826_v32 = vmax.f32 %v1794_v53, 0.0  ;;  %v1827_v14 = vmax.f32 %v1795_v46, 0.0  ;;  %v1120_v33 = vmul.f32 %v3799_v36, %v1386_v34  ;;  %v1121_v59 = vmul.f32 %v3799_v36, %v1690_v23 }
 0x1c2   : > { %v1555_v30 = vadd.f32 %v1523_v12, %v1453_v56  ;;  %v1051_v22 = vadd.f32 %v1019_v9, %v918_v18  ;;  %v1052_v50 = vadd.f32 %v1020_v51, %v919_v3  ;;  %v1556_v63 = vadd.f32 %v1524_v47, %v1454_v57  ;;  %v2852_v56 = vld [vmem:[%s3171_s20] sm:$0xff]   ;;  %v2854_v3 = vld [vmem:[%s3171_s20 + $0x10] sm:$0xff]   ;;  %v2857_v51 = vld [vmem:[%s3171_s20 + $0x28] sm:$0xff]  }
 0x1c3   : > { %v1845_v58 = vpack.c.bf16 %v1827_v14, %v1826_v32  ;;  %v1725_v40 = vmul.f32 %v3792_v4, %v1386_v34  ;;  %v1222_v16 = vmul.f32 %v3845_v11, %v1186_v5  ;;  %v1221_v8 = vmul.f32 %v3845_v11, %v1488_v54  ;;  %v1591_v11 = vld [vmem:[#allocation2 + $0x271] sm:$0xff]  ;;  %v2856_v9 = vld [vmem:[%s3171_s20 + $0x20] sm:$0xff]   ;;  %v2861_v57 = vld [vmem:[%s3171_s20 + $0x48] sm:$0xff]  }
 0x1c4   : > { %v1656_v17 = vadd.f32 %v1624_v48, %v1555_v30  ;;  %v1152_v43 = vadd.f32 %v1120_v33, %v1051_v22  ;;  %v1153_v6 = vadd.f32 %v1121_v59, %v1052_v50  ;;  %v1657_v62 = vadd.f32 %v1625_v35, %v1556_v63  ;;  %v2859_v32 = vld [vmem:[%s3171_s20 + $0x38] sm:$0xff]   ;;  %v2860_v14 = vld [vmem:[%s3171_s20 + $0x40] sm:$0xff]   ;;  %v2862_v33 = vld [vmem:[%s3171_s20 + $0x50] sm:$0xff]  }
 0x1c5   : > { %2702 = vmatmul.mubr.msk.bf16.gmra.mxu1 %vm736_vm1, %v1845_v58  ;;  %v1726_v2 = vmul.f32 %v3792_v4, %v1690_v23  ;;  %v1322_v36 = vmul.f32 %v3857_v0, %v1589_v24  ;;  %v1323_v38 = vmul.f32 %v3857_v0, %v1287_v44  ;;  %v1423_v37 = vmul.f32 %v3864_v21, %v1690_v23  ;;  %v1692_v24 = vld [vmem:[#allocation2 + $0x272] sm:$0xff]  ;;  %v2864_v22 = vld [vmem:[%s3171_s20 + $0x60] sm:$0xff]   ;;  %v2865_v50 = vld [vmem:[%s3171_s20 + $0x68] sm:$0xff]  }
 0x1c6   : > { %v1757_v49 = vadd.f32 %v1725_v40, %v1656_v17  ;;  %v1253_v28 = vadd.f32 %v1221_v8, %v1152_v43  ;;  %v1254_v34 = vadd.f32 %v1222_v16, %v1153_v6  ;;  %v1424_v39 = vmul.f32 %v3864_v21, %v1388_v20  ;;  %v2863_v30 = vld [vmem:[%s3171_s20 + $0x58] sm:$0xff]   ;;  %v2866_v59 = vld [vmem:[%s3171_s20 + $0x70] sm:$0xff]  }
 0x1c7   : > { %v1758_v10 = vadd.f32 %v1726_v2, %v1657_v62  ;;  %v1526_v15 = vmul.f32 %v3817_v25, %v1490_v7  ;;  %v1525_v1 = vmul.f32 %v3817_v25, %v1186_v5  ;;  %v1627_v0 = vmul.f32 %v3828_v55, %v1591_v11  ;;  %v2858_v5 = vld [vmem:[%s3171_s20 + $0x30] sm:$0xff]   ;;  %v2867_v58 = vld [vmem:[%s3171_s20 + $0x78] sm:$0xff]  }
 0x1c8   : > { %v1796_v61 = vadd.f32 %v3896_v13, %v1757_v49  ;;  %v1354_v41 = vadd.f32 %v1322_v36, %v1253_v28  ;;  %v1355_v60 = vadd.f32 %v1323_v38, %v1254_v34  ;;  %v1626_v19 = vmul.f32 %v3828_v55, %v1287_v44 }
 0x1c9   : > { %v1797_v54 = vadd.f32 %v3896_v13, %v1758_v10  ;;  %v1728_v12 = vmul.f32 %v3792_v4, %v1692_v24  ;;  %v1727_v35 = vmul.f32 %v3792_v4, %v1388_v20  ;;  %v2853_v4 = vld [vmem:[%s3171_s20 + $0x8] sm:$0xff]  }
 0x1ca   : > { %v1455_v42 = vadd.f32 %v1423_v37, %v1354_v41  ;;  %v1456_v26 = vadd.f32 %v1424_v39, %v1355_v60  ;;  %v1828_v27 = vmax.f32 %v1796_v61, 0.0 }
 0x1cb   : > { %v1829_v52 = vmax.f32 %v1797_v54, 0.0 }
 0x1cc   : > { %v1557_v45 = vadd.f32 %v1525_v1, %v1455_v42  ;;  %v1558_v21 = vadd.f32 %v1526_v15, %v1456_v26  ;;  %v4059_v15 = vld [vmem:[%s4208_s6] ss:$0 sm:$0xff] }
 0x1cd   : > { %v1846_v29 = vpack.c.bf16 %v1829_v52, %v1828_v27 }
 0x1ce   : > { %v1658_v47 = vadd.f32 %v1626_v19, %v1557_v45  ;;  %v1659_v48 = vadd.f32 %v1627_v0, %v1558_v21 }
 0x1cf   : > { %2705 = vmatprep.mubr.msk.bf16.mxu1 %vm736_vm1, %v1846_v29 }
 0x1d0   : > { %v1759_v25 = vadd.f32 %v1727_v35, %v1658_v47  ;;  %v1760_v53 = vadd.f32 %v1728_v12, %v1659_v48 }
 0x1d2   : > { %v1798_v46 = vadd.f32 %v3896_v13, %v1759_v25  ;;  %v1799_v55 = vadd.f32 %v3896_v13, %v1760_v53  ;;  %v2855_v13 = vld [vmem:[%s3171_s20 + $0x18] sm:$0xff]  }
 0x1d4   : > { %v1830_v31 = vmax.f32 %v1798_v46, 0.0  ;;  %v1831_v23 = vmax.f32 %v1799_v55, 0.0 }
 0x1d6   : > { %v1847_v18 = vpack.c.bf16 %v1831_v23, %v1830_v31 }
 0x1d8   : > { %2706 = vmatmul.mubr.msk.bf16.gmra.mxu1 %vm736_vm1, %v1847_v18 }
 0x1d9   : > { %2717 = vmatprep.mubr.msk.bf16.mxu1 %vm494_vm0, %v2852_v56 }
 0x1e0   : > { %2718 = vmatmul.mubr.msk.bf16.vlgmr.msra.gmra.mxu1 %vm494_vm0, %v2853_v4 }
 0x1e1   : > { %2721 = vmatprep.mubr.msk.bf16.mxu1 %vm494_vm0, %v2854_v3 }
 0x1e8   : > { %2722 = vmatmul.mubr.msk.bf16.gmra.mxu1 %vm494_vm0, %v2855_v13 }
 0x1e9   : > { %2725 = vmatprep.mubr.msk.bf16.mxu1 %vm494_vm0, %v2856_v9 }
 0x1f0   : > { %2726 = vmatmul.mubr.msk.bf16.gmra.mxu1 %vm494_vm0, %v2857_v51 }
 0x1f1   : > { %2729 = vmatprep.mubr.msk.bf16.mxu1 %vm494_vm0, %v2858_v5 }
 0x1f8   : > { %2730 = vmatmul.mubr.msk.bf16.gmra.mxu1 %vm494_vm0, %v2859_v32 }
 0x1f9   : > { %2733 = vmatprep.mubr.msk.bf16.mxu1 %vm494_vm0, %v2860_v14 }
 0x200   : > { %2734 = vmatmul.mubr.msk.bf16.gmra.mxu1 %vm494_vm0, %v2861_v57 }
 0x201   : > { %2737 = vmatprep.mubr.msk.bf16.mxu1 %vm494_vm0, %v2862_v33 }
 0x208   : > { %2738 = vmatmul.mubr.msk.bf16.gmra.mxu1 %vm494_vm0, %v2863_v30 }
 0x209   : > { %2741 = vmatprep.mubr.msk.bf16.mxu1 %vm494_vm0, %v2864_v22 }
 0x20b   : > { %v2679_v7 = vpop.f32.mrf.mxu0 }
 0x20c   : > { %v1962_v26 = vadd.f32 %v2679_v7, %v4059_v15 }
 0x20d   : > { %v1953_v28 = vpop.f32.mrf.mxu0 }
 0x20e   : > { %v1954_v0 = vadd.f32 %v4059_v15, %v1953_v28 }
 0x20f   : > { %v2680_v38 = vpop.f32.mrf.mxu0 }
 0x210   : > { %2742 = vmatmul.mubr.msk.bf16.gmra.mxu1 %vm494_vm0, %v2865_v50  ;;  %v1965_v21 = vadd.f32 %v2680_v38, %v4059_v15 }
 0x211   : > { %2745 = vmatprep.mubr.msk.bf16.mxu1 %vm494_vm0, %v2866_v59  ;;  %v1956_v37 = vpop.f32.mrf.mxu0 }
 0x212   : > { %v1957_v47 = vadd.f32 %v4059_v15, %v1956_v37 }
 0x218   : > { %2746 = vmatmul.mubr.msk.bf16.gmra.mxu1 %vm494_vm0, %v2867_v58 }
 0x226   : > { %v2683_v11 = vpop.f32.mrf.mxu0 }
 0x227   : > { %v1978_v46 = vadd.f32 %v2683_v11, %v4059_v15 }
 0x228   : > { %v1969_v41 = vpop.f32.mrf.mxu0 }
 0x229   : > { %v1970_v18 = vadd.f32 %v4059_v15, %v1969_v41 }
 0x22a   : > { %v2684_v24 = vpop.f32.mrf.mxu0 }
 0x22b   : > { %v1981_v9 = vadd.f32 %v2684_v24, %v4059_v15 }
 0x22c   : > { %v1972_v52 = vpop.f32.mrf.mxu0 }
 0x22d   : > { %v1973_v14 = vadd.f32 %v4059_v15, %v1972_v52 }
 0x23a   : > { %v2687_v25 = vpop.f32.mrf.mxu0 }
 0x23b   : > { %v1994_v50 = vadd.f32 %v2687_v25, %v4059_v15 }
 0x23c   : > { %v1985_v3 = vpop.f32.mrf.mxu0 }
 0x23d   : > { %v1986_v28 = vadd.f32 %v4059_v15, %v1985_v3 }
 0x23e   : > { %v2688_v30 = vpop.f32.mrf.mxu0 }
 0x23f   : > { %v1997_v24 = vadd.f32 %v2688_v30, %v4059_v15 }
 0x240   : > { %v1988_v11 = vpop.f32.mrf.mxu0 }
 0x24e   : > { %v4020_v63 = vpop.f32.mrf.mxu1 }
 0x250   : > { %v4022_v40 = vpop.f32.mrf.mxu1 }
 0x252   : > { %v4024_v16 = vpop.f32.mrf.mxu1 }
 0x254   : > { %v4026_v44 = vpop.f32.mrf.mxu1 }
 0x260   : > { %v4028_v17 = vpop.f32.mrf.mxu1 }
 0x262   : > { %v4030_v43 = vpop.f32.mrf.mxu1 }
 0x264   : > { %v4032_v6 = vpop.f32.mrf.mxu1 }
 0x266   : > { %v4034_v8 = vpop.f32.mrf.mxu1 }
 0x273   : > { %v4036_v20 = vpop.f32.mrf.mxu1 }
 0x275   : > { %v4038_v62 = vpop.f32.mrf.mxu1 }
 0x277   : > { %v4040_v2 = vpop.f32.mrf.mxu1 }
 0x279   : > { %v4042_v36 = vpop.f32.mrf.mxu1 }
 0x285   : > { %v4044_v49 = vpop.f32.mrf.mxu1 }
 0x287   : > { %v4046_v34 = vpop.f32.mrf.mxu1 }
 0x289   : > { %v4048_v10 = vpop.f32.mrf.mxu1 }
 0x28b   : > { %v4050_v39 = vpop.f32.mrf.mxu1 }
 0x298   : > { %v4052_v61 = vpop.f32.mrf.mxu1 }
 0x29a   : > { %v4054_v60 = vpop.f32.mrf.mxu1 }
 0x29c   : > { %v4061_v54 = vpop.f32.mrf.mxu1 }
 0x29e   : > { %v4063_v42 = vpop.f32.mrf.mxu1 }
 0x2a0   : > { %v2719_v1 = vpop.f32.mrf.mxu1 }
 0x2a1   : > { %v2275_v27 = vadd.f32 %v2719_v1, %v1962_v26 }
 0x2a2   : > { %v2146_v45 = vpop.f32.mrf.mxu1 }
 0x2a3   : > { %v2307_v19 = vmax.f32 %v2275_v27, 0.0  ;;  %v2273_v12 = vadd.f32 %v2146_v45, %v1954_v0  ;;  %v1989_v27 = vadd.f32 %v4059_v15, %v1988_v11 }
 0x2a4   : > { %v2720_v29 = vpop.f32.mrf.mxu1 }
 0x2a5   : > { %2339 = vst [vmem:[%s4070_s14 + $0x10] sm:$0xff] %v2307_v19  ;;  %v2305_v48 = vmax.f32 %v2273_v12, 0.0  ;;  %v2276_v35 = vadd.f32 %v2720_v29, %v1965_v21  ;;  %v2010_v19 = vadd.f32 %v4020_v63, %v4059_v15 }
 0x2a6   : > { %v2149_v53 = vpop.f32.mrf.mxu1 }
 0x2a7   : > { %2337 = vst [vmem:[%s4070_s14] sm:$0xff] %v2305_v48  ;;  %v2308_v55 = vmax.f32 %v2276_v35, 0.0  ;;  %v2274_v31 = vadd.f32 %v2149_v53, %v1957_v47  ;;  %v2002_v48 = vadd.f32 %v4059_v15, %v4022_v40 }
 0x2a8   : > { %v2723_v23 = vpop.f32.mrf.mxu1 }
 0x2a9   : > { %2340 = vst [vmem:[%s4070_s14 + $0x18] sm:$0xff] %v2308_v55  ;;  %v2306_v56 = vmax.f32 %v2274_v31, 0.0  ;;  %v2279_v4 = vadd.f32 %v2723_v23, %v1978_v46  ;;  %v2013_v46 = vadd.f32 %v4024_v16, %v4059_v15  ;;  %v2005_v23 = vadd.f32 %v4059_v15, %v4026_v44 }
 0x2aa   : > { %v2162_v13 = vpop.f32.mrf.mxu1 }
 0x2ab   : > { %2338 = vst [vmem:[%s4070_s14 + $0x8] sm:$0xff] %v2306_v56  ;;  %v2311_v51 = vmax.f32 %v2279_v4, 0.0  ;;  %v2277_v5 = vadd.f32 %v2162_v13, %v1970_v18  ;;  %v2026_v4 = vadd.f32 %v4028_v17, %v4059_v15 }
 0x2ac   : > { %v2724_v32 = vpop.f32.mrf.mxu1 }
 0x2ad   : > { %2343 = vst [vmem:[%s4070_s14 + $0x30] sm:$0xff] %v2311_v51  ;;  %v2309_v57 = vmax.f32 %v2277_v5, 0.0  ;;  %v2280_v33 = vadd.f32 %v2724_v32, %v1981_v9  ;;  %v2018_v9 = vadd.f32 %v4059_v15, %v4030_v43  ;;  %v2029_v32 = vadd.f32 %v4032_v6, %v4059_v15 }
 0x2ae   : > { %v2165_v22 = vpop.f32.mrf.mxu1 }
 0x2af   : > { %2341 = vst [vmem:[%s4070_s14 + $0x20] sm:$0xff] %v2309_v57  ;;  %v2312_v59 = vmax.f32 %v2280_v33, 0.0  ;;  %v2278_v58 = vadd.f32 %v2165_v22, %v1973_v14  ;;  %v2021_v33 = vadd.f32 %v4059_v15, %v4034_v8 }
 0x2b0   : > { %v2727_v7 = vpop.f32.mrf.mxu1 }
 0x2b1   : > { %2344 = vst [vmem:[%s4070_s14 + $0x38] sm:$0xff] %v2312_v59  ;;  %v2310_v38 = vmax.f32 %v2278_v58, 0.0  ;;  %v2283_v37 = vadd.f32 %v2727_v7, %v1994_v50  ;;  %v2042_v50 = vadd.f32 %v4036_v20, %v4059_v15  ;;  %v2034_v7 = vadd.f32 %v4059_v15, %v4038_v62 }
 0x2b2   : > { %v2178_v41 = vpop.f32.mrf.mxu1 }
 0x2b3   : > { %2342 = vst [vmem:[%s4070_s14 + $0x28] sm:$0xff] %v2310_v38  ;;  %v2315_v26 = vmax.f32 %v2283_v37, 0.0  ;;  %v2281_v1 = vadd.f32 %v2178_v41, %v1986_v28  ;;  %v2045_v37 = vadd.f32 %v4040_v2, %v4059_v15 }
 0x2b4   : > { %v2728_v0 = vpop.f32.mrf.mxu1 }
 0x2b5   : > { %2347 = vst [vmem:[%s4070_s14 + $0x50] sm:$0xff] %v2315_v26  ;;  %v2313_v52 = vmax.f32 %v2281_v1, 0.0  ;;  %v2284_v45 = vadd.f32 %v2728_v0, %v1997_v24  ;;  %v2037_v24 = vadd.f32 %v4059_v15, %v4042_v36  ;;  %v2058_v0 = vadd.f32 %v4044_v49, %v4059_v15 }
 0x2b6   : > { %v2181_v21 = vpop.f32.mrf.mxu1 }
 0x2b7   : > { %2345 = vst [vmem:[%s4070_s14 + $0x40] sm:$0xff] %v2313_v52  ;;  %v2316_v12 = vmax.f32 %v2284_v45, 0.0  ;;  %v2282_v29 = vadd.f32 %v2181_v21, %v1989_v27  ;;  %v2050_v45 = vadd.f32 %v4059_v15, %v4046_v34 }
 0x2b8   : > { %v2731_v47 = vpop.f32.mrf.mxu1 }
 0x2b9   : > { %2348 = vst [vmem:[%s4070_s14 + $0x58] sm:$0xff] %v2316_v12  ;;  %v2314_v35 = vmax.f32 %v2282_v29, 0.0  ;;  %v2287_v25 = vadd.f32 %v2731_v47, %v2010_v19  ;;  %v2061_v12 = vadd.f32 %v4048_v10, %v4059_v15 }
 0x2ba   : > { %v2194_v53 = vpop.f32.mrf.mxu1 }
 0x2bb   : > { %2346 = vst [vmem:[%s4070_s14 + $0x48] sm:$0xff] %v2314_v35  ;;  %v2319_v55 = vmax.f32 %v2287_v25, 0.0  ;;  %v2285_v63 = vadd.f32 %v2194_v53, %v2002_v48  ;;  %v2053_v48 = vadd.f32 %v4059_v15, %v4050_v39  ;;  %v2074_v53 = vadd.f32 %v4052_v61, %v4059_v15 }
 0x2bc   : > { %v2732_v31 = vpop.f32.mrf.mxu1 }
 0x2bd   : > { %2351 = vst [vmem:[%s4070_s14 + $0x70] sm:$0xff] %v2319_v55  ;;  %v2317_v18 = vmax.f32 %v2285_v63, 0.0  ;;  %v2288_v40 = vadd.f32 %v2732_v31, %v2013_v46  ;;  %v2066_v63 = vadd.f32 %v4059_v15, %v4054_v60 }
 0x2be   : > { %v2197_v56 = vpop.f32.mrf.mxu1 }
 0x2bf   : > { %2349 = vst [vmem:[%s4070_s14 + $0x60] sm:$0xff] %v2317_v18  ;;  %v2320_v3 = vmax.f32 %v2288_v40, 0.0  ;;  %v2286_v16 = vadd.f32 %v2197_v56, %v2005_v23  ;;  %v2077_v18 = vadd.f32 %v4061_v54, %v4059_v15 }
 0x2c0   : > { %v2735_v13 = vpop.f32.mrf.mxu1 }
 0x2c1   : > { %2352 = vst [vmem:[%s4070_s14 + $0x78] sm:$0xff] %v2320_v3  ;;  %v2318_v51 = vmax.f32 %v2286_v16, 0.0  ;;  %v2291_v44 = vadd.f32 %v2735_v13, %v2026_v4  ;;  %v2069_v4 = vadd.f32 %v4059_v15, %v4063_v42 }
 0x2c2   : > { %v2210_v5 = vpop.f32.mrf.mxu1 }
 0x2c3   : > { %2350 = vst [vmem:[%s4070_s14 + $0x68] sm:$0xff] %v2318_v51  ;;  %v2323_v14 = vmax.f32 %v2291_v44, 0.0  ;;  %v2289_v17 = vadd.f32 %v2210_v5, %v2018_v9 }
 0x2c4   : > { %v2736_v57 = vpop.f32.mrf.mxu1 }
 0x2c5   : > { %2355 = vst [vmem:[%s4070_s14 + $0x90] sm:$0xff] %v2323_v14  ;;  %v2321_v30 = vmax.f32 %v2289_v17, 0.0  ;;  %v2292_v43 = vadd.f32 %v2736_v57, %v2029_v32 }
 0x2c6   : > { %v2213_v22 = vpop.f32.mrf.mxu1 }
 0x2c7   : > { %2353 = vst [vmem:[%s4070_s14 + $0x80] sm:$0xff] %v2321_v30  ;;  %v2324_v59 = vmax.f32 %v2292_v43, 0.0  ;;  %v2290_v6 = vadd.f32 %v2213_v22, %v2021_v33 }
 0x2c8   : > { %v2739_v58 = vpop.f32.mrf.mxu1 }
 0x2c9   : > { %2356 = vst [vmem:[%s4070_s14 + $0x98] sm:$0xff] %v2324_v59  ;;  %v2322_v28 = vmax.f32 %v2290_v6, 0.0  ;;  %v2295_v8 = vadd.f32 %v2739_v58, %v2042_v50 }
 0x2ca   : > { %v2226_v38 = vpop.f32.mrf.mxu1 }
 0x2cb   : > { %2354 = vst [vmem:[%s4070_s14 + $0x88] sm:$0xff] %v2322_v28  ;;  %v2327_v11 = vmax.f32 %v2295_v8, 0.0  ;;  %v2293_v20 = vadd.f32 %v2226_v38, %v2034_v7 }
 0x2cc   : > { %v2740_v41 = vpop.f32.mrf.mxu1 }
 0x2cd   : > { %2359 = vst [vmem:[%s4070_s14 + $0xb0] sm:$0xff] %v2327_v11  ;;  %v2325_v26 = vmax.f32 %v2293_v20, 0.0  ;;  %v2296_v62 = vadd.f32 %v2740_v41, %v2045_v37 }
 0x2ce   : > { %v2229_v1 = vpop.f32.mrf.mxu1 }
 0x2cf   : > { %2357 = vst [vmem:[%s4070_s14 + $0xa0] sm:$0xff] %v2325_v26  ;;  %v2328_v27 = vmax.f32 %v2296_v62, 0.0  ;;  %v2294_v2 = vadd.f32 %v2229_v1, %v2037_v24 }
 0x2d0   : > { %v2743_v52 = vpop.f32.mrf.mxu1 }
 0x2d1   : > { %2360 = vst [vmem:[%s4070_s14 + $0xb8] sm:$0xff] %v2328_v27  ;;  %v2326_v21 = vmax.f32 %v2294_v2, 0.0  ;;  %v2299_v36 = vadd.f32 %v2743_v52, %v2058_v0 }
 0x2d2   : > { %v2242_v19 = vpop.f32.mrf.mxu1 }
 0x2d3   : > { %2358 = vst [vmem:[%s4070_s14 + $0xa8] sm:$0xff] %v2326_v21  ;;  %v2331_v29 = vmax.f32 %v2299_v36, 0.0  ;;  %v2297_v49 = vadd.f32 %v2242_v19, %v2050_v45 }
 0x2d4   : > { %v2744_v47 = vpop.f32.mrf.mxu1 }
 0x2d5   : > { %2363 = vst [vmem:[%s4070_s14 + $0xd0] sm:$0xff] %v2331_v29  ;;  %v2329_v35 = vmax.f32 %v2297_v49, 0.0  ;;  %v2300_v34 = vadd.f32 %v2744_v47, %v2061_v12 }
 0x2d6   : > { %v2245_v25 = vpop.f32.mrf.mxu1 }
 0x2d7   : > { %2361 = vst [vmem:[%s4070_s14 + $0xc0] sm:$0xff] %v2329_v35  ;;  %v2332_v46 = vmax.f32 %v2300_v34, 0.0  ;;  %v2298_v10 = vadd.f32 %v2245_v25, %v2053_v48 }
 0x2d8   : > { %v2747_v55 = vpop.f32.mrf.mxu1 }
 0x2d9   : > { %2364 = vst [vmem:[%s4070_s14 + $0xd8] sm:$0xff] %v2332_v46  ;;  %v2330_v39 = vmax.f32 %v2298_v10, 0.0  ;;  %v2303_v31 = vadd.f32 %v2747_v55, %v2074_v53 }
 0x2da   : > { %v2258_v23 = vpop.f32.mrf.mxu1 }
 0x2db   : > { %2362 = vst [vmem:[%s4070_s14 + $0xc8] sm:$0xff] %v2330_v39  ;;  %v2335_v61 = vmax.f32 %v2303_v31, 0.0  ;;  %v2301_v40 = vadd.f32 %v2258_v23, %v2066_v63 }
 0x2dc   : > { %v2748_v56 = vpop.f32.mrf.mxu1 }
 0x2dd   : > { %2367 = vst [vmem:[%s4070_s14 + $0xf0] sm:$0xff] %v2335_v61  ;;  %v2333_v60 = vmax.f32 %v2301_v40, 0.0  ;;  %v2304_v3 = vadd.f32 %v2748_v56, %v2077_v18 }
 0x2de   : > { %v2261_v16 = vpop.f32.mrf.mxu1 }
 0x2df   : > { %2365 = vst [vmem:[%s4070_s14 + $0xe0] sm:$0xff] %v2333_v60  ;;  %v2336_v13 = vmax.f32 %v2304_v3, 0.0  ;;  %v2302_v54 = vadd.f32 %v2261_v16, %v2069_v4 }
 0x2e1   : > { %2368 = vst [vmem:[%s4070_s14 + $0xf8] sm:$0xff] %v2336_v13  ;;  %v2334_v15 = vmax.f32 %v2302_v54, 0.0 }
 0x2e3   : > { %2366 = vst [vmem:[%s4070_s14 + $0xe8] sm:$0xff] %v2334_v15 }
 0x2e4   : > { %2935 = shalt.err (!%p2932_p0)
}
 0x2e5   : > { %s2936_s10 = scalar_lea.hbm %s4155_s18, 4096  ;;  %s2940_s21 = scalar_lea.hbm %s4210_s8, 8192 }
 0x2e6   : > { %p2937_p5 = scmp.ne.s32.totalorder %s4155_s18, %s2936_s10  ;;  %p2941_p4 = scmp.lt.s32.totalorder %s4155_s18, %s4210_s8 }
 0x2e7   : > { %p2942_p6 = scmp.lt.s32.totalorder %s2940_s21, %s2936_s10 }
 0x2e8   : > { %p2938_p2 = pnand %p2937_p5, %p4235_p11 }
 0x2e9   : > { %p2943_p8 = por %p2942_p6, %p2941_p4 }
 0x2ea   : > { %p2939_p1 = pneg %p2938_p2 }
 0x2ec   : > { %p2944_p3 = pnand %p2943_p8, %p2939_p1 }
 0x2ee   : > { %2947 = shalt.err (!%p2944_p3)
}
 0x2ef   : > { %s2998_s13 = smov 128   ;;  %s2999_s23 = smov 8  }
 0x2f0   : > { %2759 = dma.vmem_to_hbm [thread:$0]  (%p4235_p11), %s4157_s16, 4096, %s4155_s18, %s2370_s19, %s2998_s13, %s2998_s13, %s2999_s23  }
 0x2f1 PF: > { %s2399_s9 = sand.u32 1, %s2978_s27   ;;  %p4236_p7 = scmp.ne.s32.totalorder %s4221_s12, 0 }
 0x2f2   : > { %p4237_p9 = scmp.ge.s32.totalorder %s2990_s30, 2  ;;  %s2400_s11 = scalar_lea.sflag [#allocation5], %s2399_s9 }
 0x2f4   : > { %p2770_p10 = pnand %p4237_p9, %p4236_p7 }
 0x2f6   : > { %p2771_p12 = pneg %p2770_p10 }
 0x2f8   : > { %2973 = dma.done.wait (%p2771_p12), %s2400_s11, 4096  }
 0x2f9   : > { %2975 = vsyncadd (%p2771_p12), %s2400_s11, 4294963200  ;;  %s4238_s30 = sld [smem:[#allocation12_spill]]  ;;  %s4239_s27 = smov %s2982_s28 }
 0x2fa   : > { %s4240_s28 = smov %s2986_s29  ;;  %s4241_s29 = smov %s3119_s25 }
 0x2ff   : > { %p22_p13 = scmp.ge.s32.totalorder %s4238_s30, 4  }
 0x301   :  { %24 = sbr.rel (!%p22_p13) target bundleno = 8 (0x8), region = 103 }
 0x306   :  { %2405 = vsyncpa [#allocation4], 1 }
 0x307   :  { %2407 = vsyncpa [#allocation4 + $0x1], 1 }
 0x308   :  { %2408 = vsyncpa [#allocation7], 1 }
 0x309   :  { %2409 = vsyncpa [#allocation5], 1 }
 0x30a   :  { %2411 = vsyncpa [#allocation5 + $0x1], 1 }

</bundles_post_ra>
